<compile_context>
chip_gen: v7x
topology: tpu7x:2x2x1
jax: 0.10.0
libtpu: 0.0.40
codegen_flags: <defaults>
</compile_context>

<pallas_src>
import numpy as np
import jax
import jax.numpy as jnp
from jax.experimental import pallas as pl
from jax.experimental.pallas import tpu as pltpu


def _round_up(x, m):
    return ((x + m - 1) // m) * m


# ---------------------------------------------------------------------------
# Pallas kernel
# ---------------------------------------------------------------------------
def make_gru_decoder_kernel(seq_len, batch, hidden):
    H = hidden
    B = batch

    def kernel(inp_ref, h0_ref, wih_t_ref, bih_ref, rhs_ref, bfus_ref,
               fcw_t_ref, fcb_ref, dec_ref, hstack_ref):
        # Input projection for step 0 only (the real `inputs` argument).
        gi0 = (jnp.dot(inp_ref[...], wih_t_ref[...],
                       preferred_element_type=jnp.float32) + bih_ref[...])   # [B, 3H]

        rhs = rhs_ref[...]      # [H, 6H] = [W_hh^T | fc_W^T @ W_ih^T]
        bfus = bfus_ref[...]    # [1, 6H] = [b_hh    | fc_b @ W_ih^T + b_ih]
        h = h0_ref[...]         # [B, H]

        for s in range(seq_len):                            # static -> fully unrolled
            # One fused MXU matmul per step: gh_s and (folded) gi_s together.
            fused = jnp.dot(h, rhs, preferred_element_type=jnp.float32) + bfus
            gh = fused[:, :3 * H]                           # h_{s-1} @ W_hh^T + b_hh
            gi = gi0 if s == 0 else fused[:, 3 * H:]        # fc->W_ih projection, folded
            r = jax.nn.sigmoid(gi[:, :H] + gh[:, :H])
            z = jax.nn.sigmoid(gi[:, H:2 * H] + gh[:, H:2 * H])
            n = jnp.tanh(gi[:, 2 * H:] + r * gh[:, 2 * H:])
            h = (1.0 - z) * n + z * h
            # Stash hidden states already in reversed order (dec_outputs[::-1]).
            hstack_ref[pl.ds((seq_len - 1 - s) * B, B), :] = h

        # Single batched fc over all steps; lane-dense 128-wide output, one full store.
        dec_ref[...] = (jnp.dot(hstack_ref[...], fcw_t_ref[...],
                                preferred_element_type=jnp.float32) + fcb_ref[...])

    return kernel


# ---------------------------------------------------------------------------
# Wrapper: weight fusion / padding glue + pallas_call
# ---------------------------------------------------------------------------
def gru_decoder_forward(inputs, h_0, seq_len, params):
    inputs = inputs.astype(jnp.float32)
    h_0 = h_0.astype(jnp.float32)
    B, E = inputs.shape
    H = h_0.shape[1]
    E_pad = _round_up(E, 128)          # lane-dense padding for in/out feature axis

    w_ih = params['w_ih'].astype(jnp.float32)   # [3H, E]
    w_hh = params['w_hh'].astype(jnp.float32)   # [3H, H]
    b_ih = params['b_ih'].astype(jnp.float32)   # [3H]
    b_hh = params['b_hh'].astype(jnp.float32)   # [3H]
    fc_w = params['fc_w'].astype(jnp.float32)   # [E, H]
    fc_b = params['fc_b'].astype(jnp.float32)   # [E]

    hp = jax.lax.Precision.HIGHEST
    # Fold fc into the input-to-hidden projection of the next step.
    W_comb = jnp.dot(fc_w.T, w_ih.T, precision=hp)            # [H, 3H]
    b_comb = jnp.dot(fc_b, w_ih.T, precision=hp) + b_ih       # [3H]
    rhs_fused = jnp.concatenate([w_hh.T, W_comb], axis=1)     # [H, 6H]
    b_fused = jnp.concatenate([b_hh, b_comb])[None, :]        # [1, 6H]

    # Step-0 input projection operands (zero-padded along E -> exact result).
    inputs_pad = jnp.pad(inputs, ((0, 0), (0, E_pad - E)))            # [B, E_pad]
    w_ih_t_pad = jnp.pad(w_ih.T, ((0, E_pad - E), (0, 0)))            # [E_pad, 3H]
    b_ih_row = b_ih[None, :]                                          # [1, 3H]

    # fc applied once at the end; pad output features to a full 128-lane slab.
    fc_w_t_pad = jnp.pad(fc_w.T, ((0, 0), (0, E_pad - E)))            # [H, E_pad]
    fc_b_pad = jnp.pad(fc_b, (0, E_pad - E))[None, :]                 # [1, E_pad]

    kernel = make_gru_decoder_kernel(seq_len, B, H)
    vspec = pl.BlockSpec(memory_space=pltpu.MemorySpace.VMEM)

    dec = pl.pallas_call(
        kernel,
        out_shape=jax.ShapeDtypeStruct((seq_len * B, E_pad), jnp.float32),
        in_specs=[vspec] * 8,
        out_specs=vspec,
        scratch_shapes=[pltpu.VMEM((seq_len * B, H), jnp.float32)],
    )(inputs_pad, h_0, w_ih_t_pad, b_ih_row, rhs_fused, b_fused,
      fc_w_t_pad, fc_b_pad)

    # [seq_len*B, E_pad] -> [B, seq_len, E]  (== torch.stack(dec_outputs[::-1], dim=1))
    return dec.reshape(seq_len, B, E_pad)[:, :, :E].transpose(1, 0, 2)


# ---------------------------------------------------------------------------
# Pure-JAX reference (un-fused, mirrors the PyTorch module step by step)
# ---------------------------------------------------------------------------
def reference_forward(inputs, h_0, seq_len, p):
    H = h_0.shape[1]

    def gru_cell(x, h):
        gi = x @ p['w_ih'].T + p['b_ih']
        gh = h @ p['w_hh'].T + p['b_hh']
        r = jax.nn.sigmoid(gi[:, :H] + gh[:, :H])
        z = jax.nn.sigmoid(gi[:, H:2 * H] + gh[:, H:2 * H])
        n = jnp.tanh(gi[:, 2 * H:] + r * gh[:, 2 * H:])
        return (1.0 - z) * n + z * h

    inp, h = inputs, h_0
    outs = []
    for _ in range(seq_len):
        h = gru_cell(inp, h)
        inp = h @ p['fc_w'].T + p['fc_b']
        outs.append(inp)
    return jnp.stack(outs[::-1], axis=1)      # [B, seq_len, E]


# ---------------------------------------------------------------------------
if __name__ == "__main__":
    # Shapes implied by the module docstring: inputs [1, 64+N], h_0 [1, 128], seq_len = NK.
    B, E, H, SEQ = 1, 66, 128, 8

    key = jax.random.PRNGKey(0)
    ks = jax.random.split(key, 8)
    bound = 1.0 / float(np.sqrt(H))
    u = lambda kk, shape: jax.random.uniform(kk, shape, jnp.float32, -bound, bound)

    params = dict(
        w_ih=u(ks[0], (3 * H, E)),
        w_hh=u(ks[1], (3 * H, H)),
        b_ih=u(ks[2], (3 * H,)),
        b_hh=u(ks[3], (3 * H,)),
        fc_w=u(ks[4], (E, H)),
        fc_b=u(ks[5], (E,)),
    )
    # "typically torch.zeros as init input" — use nonzero values to exercise the gi0 path.
    inputs = jax.random.normal(ks[6], (B, E), jnp.float32) * 0.5
    h_0 = jax.random.normal(ks[7], (B, H), jnp.float32) * 0.5

    dec = gru_decoder_forward(inputs, h_0, SEQ, params)
    dec = jax.block_until_ready(dec)

    ref = reference_forward(inputs, h_0, SEQ, params)
    np.testing.assert_allclose(np.asarray(dec), np.asarray(ref), rtol=1e-3, atol=1e-3)

    print("KERNEL_OK")
</pallas_src>

<mosaic_0001>
module attributes {stable_mosaic.version = 11 : i64} {
  func.func @kernel(%arg0: memref<1x128xf32, #tpu.memory_space<vmem>>, %arg1: memref<1x128xf32, #tpu.memory_space<vmem>>, %arg2: memref<128x384xf32, #tpu.memory_space<vmem>>, %arg3: memref<1x384xf32, #tpu.memory_space<vmem>>, %arg4: memref<128x768xf32, #tpu.memory_space<vmem>>, %arg5: memref<1x768xf32, #tpu.memory_space<vmem>>, %arg6: memref<128x128xf32, #tpu.memory_space<vmem>>, %arg7: memref<1x128xf32, #tpu.memory_space<vmem>>, %arg8: memref<8x128xf32, #tpu.memory_space<vmem>>, %arg9: memref<8x128xf32, #tpu.memory_space<vmem>>) attributes {dimension_semantics = [], scalar_prefetch = 0 : i64, scratch_operands = 1 : i64, tpu.core_type = #tpu.core_type<tc>} {
    %c0 = arith.constant 0 : index
    %c0_0 = arith.constant 0 : index
    %0 = vector.load %arg0[%c0, %c0_0] : memref<1x128xf32, #tpu.memory_space<vmem>>, vector<1x128xf32>
    %c0_1 = arith.constant 0 : index
    %c0_2 = arith.constant 0 : index
    %1 = vector.load %arg2[%c0_1, %c0_2] : memref<128x384xf32, #tpu.memory_space<vmem>>, vector<128x384xf32>
    %cst = arith.constant dense<0.000000e+00> : vector<1x384xf32>
    %2 = tpu.matmul %0, %1, %cst {dimension_numbers = #tpu.dot_dimension_numbers<[1], [0], [0], [1], [0, 0, 1, 1], [], []>} : vector<1x128xf32>, vector<128x384xf32>, vector<1x384xf32> -> vector<1x384xf32>
    %c0_3 = arith.constant 0 : index
    %c0_4 = arith.constant 0 : index
    %3 = vector.load %arg3[%c0_3, %c0_4] : memref<1x384xf32, #tpu.memory_space<vmem>>, vector<1x384xf32>
    %4 = arith.addf %2, %3 : vector<1x384xf32>
    %c0_5 = arith.constant 0 : index
    %c0_6 = arith.constant 0 : index
    %5 = vector.load %arg4[%c0_5, %c0_6] : memref<128x768xf32, #tpu.memory_space<vmem>>, vector<128x768xf32>
    %c0_7 = arith.constant 0 : index
    %c0_8 = arith.constant 0 : index
    %6 = vector.load %arg5[%c0_7, %c0_8] : memref<1x768xf32, #tpu.memory_space<vmem>>, vector<1x768xf32>
    %c0_9 = arith.constant 0 : index
    %c0_10 = arith.constant 0 : index
    %7 = vector.load %arg1[%c0_9, %c0_10] : memref<1x128xf32, #tpu.memory_space<vmem>>, vector<1x128xf32>
    %cst_11 = arith.constant dense<0.000000e+00> : vector<1x768xf32>
    %8 = tpu.matmul %7, %5, %cst_11 {dimension_numbers = #tpu.dot_dimension_numbers<[1], [0], [0], [1], [0, 0, 1, 1], [], []>} : vector<1x128xf32>, vector<128x768xf32>, vector<1x768xf32> -> vector<1x768xf32>
    %9 = arith.addf %8, %6 : vector<1x768xf32>
    %10 = vector.extract_strided_slice %9 {offsets = [0, 0], sizes = [1, 384], strides = [1, 1]} : vector<1x768xf32> to vector<1x384xf32>
    %11 = vector.extract_strided_slice %4 {offsets = [0, 0], sizes = [1, 128], strides = [1, 1]} : vector<1x384xf32> to vector<1x128xf32>
    %12 = vector.extract_strided_slice %10 {offsets = [0, 0], sizes = [1, 128], strides = [1, 1]} : vector<1x384xf32> to vector<1x128xf32>
    %13 = arith.addf %11, %12 : vector<1x128xf32>
    %14 = arith.negf %13 : vector<1x128xf32>
    %15 = math.exp %14 : vector<1x128xf32>
    %cst_12 = arith.constant 1.000000e+00 : f32
    %16 = vector.broadcast %cst_12 : f32 to vector<1x128xf32>
    %17 = arith.addf %16, %15 : vector<1x128xf32>
    %18 = arith.divf %16, %17 : vector<1x128xf32>
    %19 = vector.extract_strided_slice %4 {offsets = [0, 128], sizes = [1, 128], strides = [1, 1]} : vector<1x384xf32> to vector<1x128xf32>
    %20 = vector.extract_strided_slice %10 {offsets = [0, 128], sizes = [1, 128], strides = [1, 1]} : vector<1x384xf32> to vector<1x128xf32>
    %21 = arith.addf %19, %20 : vector<1x128xf32>
    %22 = arith.negf %21 : vector<1x128xf32>
    %23 = math.exp %22 : vector<1x128xf32>
    %cst_13 = arith.constant 1.000000e+00 : f32
    %24 = vector.broadcast %cst_13 : f32 to vector<1x128xf32>
    %25 = arith.addf %24, %23 : vector<1x128xf32>
    %26 = arith.divf %24, %25 : vector<1x128xf32>
    %27 = vector.extract_strided_slice %4 {offsets = [0, 256], sizes = [1, 128], strides = [1, 1]} : vector<1x384xf32> to vector<1x128xf32>
    %28 = vector.extract_strided_slice %10 {offsets = [0, 256], sizes = [1, 128], strides = [1, 1]} : vector<1x384xf32> to vector<1x128xf32>
    %29 = arith.mulf %18, %28 : vector<1x128xf32>
    %30 = arith.addf %27, %29 : vector<1x128xf32>
    %31 = math.tanh %30 : vector<1x128xf32>
    %cst_14 = arith.constant 1.000000e+00 : f32
    %32 = vector.broadcast %cst_14 : f32 to vector<1x128xf32>
    %33 = arith.subf %32, %26 : vector<1x128xf32>
    %34 = arith.mulf %33, %31 : vector<1x128xf32>
    %35 = arith.mulf %26, %7 : vector<1x128xf32>
    %36 = arith.addf %34, %35 : vector<1x128xf32>
    %c7 = arith.constant 7 : index
    %c0_15 = arith.constant 0 : index
    %37 = vector.load %arg9[%c7, %c0_15] : memref<8x128xf32, #tpu.memory_space<vmem>>, vector<1x128xf32>
    tpu.vector_store %arg9[%c7, %c0_15], %36 {strides = array<i32>} : memref<8x128xf32, #tpu.memory_space<vmem>>, vector<1x128xf32>,
    %cst_16 = arith.constant dense<0.000000e+00> : vector<1x768xf32>
    %38 = tpu.matmul %36, %5, %cst_16 {dimension_numbers = #tpu.dot_dimension_numbers<[1], [0], [0], [1], [0, 0, 1, 1], [], []>} : vector<1x128xf32>, vector<128x768xf32>, vector<1x768xf32> -> vector<1x768xf32>
    %39 = arith.addf %38, %6 : vector<1x768xf32>
    %40 = vector.extract_strided_slice %39 {offsets = [0, 0], sizes = [1, 384], strides = [1, 1]} : vector<1x768xf32> to vector<1x384xf32>
    %41 = vector.extract_strided_slice %39 {offsets = [0, 384], sizes = [1, 384], strides = [1, 1]} : vector<1x768xf32> to vector<1x384xf32>
    %42 = vector.extract_strided_slice %41 {offsets = [0, 0], sizes = [1, 128], strides = [1, 1]} : vector<1x384xf32> to vector<1x128xf32>
    %43 = vector.extract_strided_slice %40 {offsets = [0, 0], sizes = [1, 128], strides = [1, 1]} : vector<1x384xf32> to vector<1x128xf32>
    %44 = arith.addf %42, %43 : vector<1x128xf32>
    %45 = arith.negf %44 : vector<1x128xf32>
    %46 = math.exp %45 : vector<1x128xf32>
    %cst_17 = arith.constant 1.000000e+00 : f32
    %47 = vector.broadcast %cst_17 : f32 to vector<1x128xf32>
    %48 = arith.addf %47, %46 : vector<1x128xf32>
    %49 = arith.divf %47, %48 : vector<1x128xf32>
    %50 = vector.extract_strided_slice %41 {offsets = [0, 128], sizes = [1, 128], strides = [1, 1]} : vector<1x384xf32> to vector<1x128xf32>
    %51 = vector.extract_strided_slice %40 {offsets = [0, 128], sizes = [1, 128], strides = [1, 1]} : vector<1x384xf32> to vector<1x128xf32>
    %52 = arith.addf %50, %51 : vector<1x128xf32>
    %53 = arith.negf %52 : vector<1x128xf32>
    %54 = math.exp %53 : vector<1x128xf32>
    %cst_18 = arith.constant 1.000000e+00 : f32
    %55 = vector.broadcast %cst_18 : f32 to vector<1x128xf32>
    %56 = arith.addf %55, %54 : vector<1x128xf32>
    %57 = arith.divf %55, %56 : vector<1x128xf32>
    %58 = vector.extract_strided_slice %41 {offsets = [0, 256], sizes = [1, 128], strides = [1, 1]} : vector<1x384xf32> to vector<1x128xf32>
    %59 = vector.extract_strided_slice %40 {offsets = [0, 256], sizes = [1, 128], strides = [1, 1]} : vector<1x384xf32> to vector<1x128xf32>
    %60 = arith.mulf %49, %59 : vector<1x128xf32>
    %61 = arith.addf %58, %60 : vector<1x128xf32>
    %62 = math.tanh %61 : vector<1x128xf32>
    %cst_19 = arith.constant 1.000000e+00 : f32
    %63 = vector.broadcast %cst_19 : f32 to vector<1x128xf32>
    %64 = arith.subf %63, %57 : vector<1x128xf32>
    %65 = arith.mulf %64, %62 : vector<1x128xf32>
    %66 = arith.mulf %57, %36 : vector<1x128xf32>
    %67 = arith.addf %65, %66 : vector<1x128xf32>
    %c6 = arith.constant 6 : index
    %c0_20 = arith.constant 0 : index
    %68 = vector.load %arg9[%c6, %c0_20] : memref<8x128xf32, #tpu.memory_space<vmem>>, vector<1x128xf32>
    tpu.vector_store %arg9[%c6, %c0_20], %67 {strides = array<i32>} : memref<8x128xf32, #tpu.memory_space<vmem>>, vector<1x128xf32>,
    %cst_21 = arith.constant dense<0.000000e+00> : vector<1x768xf32>
    %69 = tpu.matmul %67, %5, %cst_21 {dimension_numbers = #tpu.dot_dimension_numbers<[1], [0], [0], [1], [0, 0, 1, 1], [], []>} : vector<1x128xf32>, vector<128x768xf32>, vector<1x768xf32> -> vector<1x768xf32>
    %70 = arith.addf %69, %6 : vector<1x768xf32>
    %71 = vector.extract_strided_slice %70 {offsets = [0, 0], sizes = [1, 384], strides = [1, 1]} : vector<1x768xf32> to vector<1x384xf32>
    %72 = vector.extract_strided_slice %70 {offsets = [0, 384], sizes = [1, 384], strides = [1, 1]} : vector<1x768xf32> to vector<1x384xf32>
    %73 = vector.extract_strided_slice %72 {offsets = [0, 0], sizes = [1, 128], strides = [1, 1]} : vector<1x384xf32> to vector<1x128xf32>
    %74 = vector.extract_strided_slice %71 {offsets = [0, 0], sizes = [1, 128], strides = [1, 1]} : vector<1x384xf32> to vector<1x128xf32>
    %75 = arith.addf %73, %74 : vector<1x128xf32>
    %76 = arith.negf %75 : vector<1x128xf32>
    %77 = math.exp %76 : vector<1x128xf32>
    %cst_22 = arith.constant 1.000000e+00 : f32
    %78 = vector.broadcast %cst_22 : f32 to vector<1x128xf32>
    %79 = arith.addf %78, %77 : vector<1x128xf32>
    %80 = arith.divf %78, %79 : vector<1x128xf32>
    %81 = vector.extract_strided_slice %72 {offsets = [0, 128], sizes = [1, 128], strides = [1, 1]} : vector<1x384xf32> to vector<1x128xf32>
    %82 = vector.extract_strided_slice %71 {offsets = [0, 128], sizes = [1, 128], strides = [1, 1]} : vector<1x384xf32> to vector<1x128xf32>
    %83 = arith.addf %81, %82 : vector<1x128xf32>
    %84 = arith.negf %83 : vector<1x128xf32>
    %85 = math.exp %84 : vector<1x128xf32>
    %cst_23 = arith.constant 1.000000e+00 : f32
    %86 = vector.broadcast %cst_23 : f32 to vector<1x128xf32>
    %87 = arith.addf %86, %85 : vector<1x128xf32>
    %88 = arith.divf %86, %87 : vector<1x128xf32>
    %89 = vector.extract_strided_slice %72 {offsets = [0, 256], sizes = [1, 128], strides = [1, 1]} : vector<1x384xf32> to vector<1x128xf32>
    %90 = vector.extract_strided_slice %71 {offsets = [0, 256], sizes = [1, 128], strides = [1, 1]} : vector<1x384xf32> to vector<1x128xf32>
    %91 = arith.mulf %80, %90 : vector<1x128xf32>
    %92 = arith.addf %89, %91 : vector<1x128xf32>
    %93 = math.tanh %92 : vector<1x128xf32>
    %cst_24 = arith.constant 1.000000e+00 : f32
    %94 = vector.broadcast %cst_24 : f32 to vector<1x128xf32>
    %95 = arith.subf %94, %88 : vector<1x128xf32>
    %96 = arith.mulf %95, %93 : vector<1x128xf32>
    %97 = arith.mulf %88, %67 : vector<1x128xf32>
    %98 = arith.addf %96, %97 : vector<1x128xf32>
    %c5 = arith.constant 5 : index
    %c0_25 = arith.constant 0 : index
    %99 = vector.load %arg9[%c5, %c0_25] : memref<8x128xf32, #tpu.memory_space<vmem>>, vector<1x128xf32>
    tpu.vector_store %arg9[%c5, %c0_25], %98 {strides = array<i32>} : memref<8x128xf32, #tpu.memory_space<vmem>>, vector<1x128xf32>,
    %cst_26 = arith.constant dense<0.000000e+00> : vector<1x768xf32>
    %100 = tpu.matmul %98, %5, %cst_26 {dimension_numbers = #tpu.dot_dimension_numbers<[1], [0], [0], [1], [0, 0, 1, 1], [], []>} : vector<1x128xf32>, vector<128x768xf32>, vector<1x768xf32> -> vector<1x768xf32>
    %101 = arith.addf %100, %6 : vector<1x768xf32>
    %102 = vector.extract_strided_slice %101 {offsets = [0, 0], sizes = [1, 384], strides = [1, 1]} : vector<1x768xf32> to vector<1x384xf32>
    %103 = vector.extract_strided_slice %101 {offsets = [0, 384], sizes = [1, 384], strides = [1, 1]} : vector<1x768xf32> to vector<1x384xf32>
    %104 = vector.extract_strided_slice %103 {offsets = [0, 0], sizes = [1, 128], strides = [1, 1]} : vector<1x384xf32> to vector<1x128xf32>
    %105 = vector.extract_strided_slice %102 {offsets = [0, 0], sizes = [1, 128], strides = [1, 1]} : vector<1x384xf32> to vector<1x128xf32>
    %106 = arith.addf %104, %105 : vector<1x128xf32>
    %107 = arith.negf %106 : vector<1x128xf32>
    %108 = math.exp %107 : vector<1x128xf32>
    %cst_27 = arith.constant 1.000000e+00 : f32
    %109 = vector.broadcast %cst_27 : f32 to vector<1x128xf32>
    %110 = arith.addf %109, %108 : vector<1x128xf32>
    %111 = arith.divf %109, %110 : vector<1x128xf32>
    %112 = vector.extract_strided_slice %103 {offsets = [0, 128], sizes = [1, 128], strides = [1, 1]} : vector<1x384xf32> to vector<1x128xf32>
    %113 = vector.extract_strided_slice %102 {offsets = [0, 128], sizes = [1, 128], strides = [1, 1]} : vector<1x384xf32> to vector<1x128xf32>
    %114 = arith.addf %112, %113 : vector<1x128xf32>
    %115 = arith.negf %114 : vector<1x128xf32>
    %116 = math.exp %115 : vector<1x128xf32>
    %cst_28 = arith.constant 1.000000e+00 : f32
    %117 = vector.broadcast %cst_28 : f32 to vector<1x128xf32>
    %118 = arith.addf %117, %116 : vector<1x128xf32>
    %119 = arith.divf %117, %118 : vector<1x128xf32>
    %120 = vector.extract_strided_slice %103 {offsets = [0, 256], sizes = [1, 128], strides = [1, 1]} : vector<1x384xf32> to vector<1x128xf32>
    %121 = vector.extract_strided_slice %102 {offsets = [0, 256], sizes = [1, 128], strides = [1, 1]} : vector<1x384xf32> to vector<1x128xf32>
    %122 = arith.mulf %111, %121 : vector<1x128xf32>
    %123 = arith.addf %120, %122 : vector<1x128xf32>
    %124 = math.tanh %123 : vector<1x128xf32>
    %cst_29 = arith.constant 1.000000e+00 : f32
    %125 = vector.broadcast %cst_29 : f32 to vector<1x128xf32>
    %126 = arith.subf %125, %119 : vector<1x128xf32>
    %127 = arith.mulf %126, %124 : vector<1x128xf32>
    %128 = arith.mulf %119, %98 : vector<1x128xf32>
    %129 = arith.addf %127, %128 : vector<1x128xf32>
    %c4 = arith.constant 4 : index
    %c0_30 = arith.constant 0 : index
    %130 = vector.load %arg9[%c4, %c0_30] : memref<8x128xf32, #tpu.memory_space<vmem>>, vector<1x128xf32>
    tpu.vector_store %arg9[%c4, %c0_30], %129 {strides = array<i32>} : memref<8x128xf32, #tpu.memory_space<vmem>>, vector<1x128xf32>,
    %cst_31 = arith.constant dense<0.000000e+00> : vector<1x768xf32>
    %131 = tpu.matmul %129, %5, %cst_31 {dimension_numbers = #tpu.dot_dimension_numbers<[1], [0], [0], [1], [0, 0, 1, 1], [], []>} : vector<1x128xf32>, vector<128x768xf32>, vector<1x768xf32> -> vector<1x768xf32>
    %132 = arith.addf %131, %6 : vector<1x768xf32>
    %133 = vector.extract_strided_slice %132 {offsets = [0, 0], sizes = [1, 384], strides = [1, 1]} : vector<1x768xf32> to vector<1x384xf32>
    %134 = vector.extract_strided_slice %132 {offsets = [0, 384], sizes = [1, 384], strides = [1, 1]} : vector<1x768xf32> to vector<1x384xf32>
    %135 = vector.extract_strided_slice %134 {offsets = [0, 0], sizes = [1, 128], strides = [1, 1]} : vector<1x384xf32> to vector<1x128xf32>
    %136 = vector.extract_strided_slice %133 {offsets = [0, 0], sizes = [1, 128], strides = [1, 1]} : vector<1x384xf32> to vector<1x128xf32>
    %137 = arith.addf %135, %136 : vector<1x128xf32>
    %138 = arith.negf %137 : vector<1x128xf32>
    %139 = math.exp %138 : vector<1x128xf32>
    %cst_32 = arith.constant 1.000000e+00 : f32
    %140 = vector.broadcast %cst_32 : f32 to vector<1x128xf32>
    %141 = arith.addf %140, %139 : vector<1x128xf32>
    %142 = arith.divf %140, %141 : vector<1x128xf32>
    %143 = vector.extract_strided_slice %134 {offsets = [0, 128], sizes = [1, 128], strides = [1, 1]} : vector<1x384xf32> to vector<1x128xf32>
    %144 = vector.extract_strided_slice %133 {offsets = [0, 128], sizes = [1, 128], strides = [1, 1]} : vector<1x384xf32> to vector<1x128xf32>
    %145 = arith.addf %143, %144 : vector<1x128xf32>
    %146 = arith.negf %145 : vector<1x128xf32>
    %147 = math.exp %146 : vector<1x128xf32>
    %cst_33 = arith.constant 1.000000e+00 : f32
    %148 = vector.broadcast %cst_33 : f32 to vector<1x128xf32>
    %149 = arith.addf %148, %147 : vector<1x128xf32>
    %150 = arith.divf %148, %149 : vector<1x128xf32>
    %151 = vector.extract_strided_slice %134 {offsets = [0, 256], sizes = [1, 128], strides = [1, 1]} : vector<1x384xf32> to vector<1x128xf32>
    %152 = vector.extract_strided_slice %133 {offsets = [0, 256], sizes = [1, 128], strides = [1, 1]} : vector<1x384xf32> to vector<1x128xf32>
    %153 = arith.mulf %142, %152 : vector<1x128xf32>
    %154 = arith.addf %151, %153 : vector<1x128xf32>
    %155 = math.tanh %154 : vector<1x128xf32>
    %cst_34 = arith.constant 1.000000e+00 : f32
    %156 = vector.broadcast %cst_34 : f32 to vector<1x128xf32>
    %157 = arith.subf %156, %150 : vector<1x128xf32>
    %158 = arith.mulf %157, %155 : vector<1x128xf32>
    %159 = arith.mulf %150, %129 : vector<1x128xf32>
    %160 = arith.addf %158, %159 : vector<1x128xf32>
    %c3 = arith.constant 3 : index
    %c0_35 = arith.constant 0 : index
    %161 = vector.load %arg9[%c3, %c0_35] : memref<8x128xf32, #tpu.memory_space<vmem>>, vector<1x128xf32>
    tpu.vector_store %arg9[%c3, %c0_35], %160 {strides = array<i32>} : memref<8x128xf32, #tpu.memory_space<vmem>>, vector<1x128xf32>,
    %cst_36 = arith.constant dense<0.000000e+00> : vector<1x768xf32>
    %162 = tpu.matmul %160, %5, %cst_36 {dimension_numbers = #tpu.dot_dimension_numbers<[1], [0], [0], [1], [0, 0, 1, 1], [], []>} : vector<1x128xf32>, vector<128x768xf32>, vector<1x768xf32> -> vector<1x768xf32>
    %163 = arith.addf %162, %6 : vector<1x768xf32>
    %164 = vector.extract_strided_slice %163 {offsets = [0, 0], sizes = [1, 384], strides = [1, 1]} : vector<1x768xf32> to vector<1x384xf32>
    %165 = vector.extract_strided_slice %163 {offsets = [0, 384], sizes = [1, 384], strides = [1, 1]} : vector<1x768xf32> to vector<1x384xf32>
    %166 = vector.extract_strided_slice %165 {offsets = [0, 0], sizes = [1, 128], strides = [1, 1]} : vector<1x384xf32> to vector<1x128xf32>
    %167 = vector.extract_strided_slice %164 {offsets = [0, 0], sizes = [1, 128], strides = [1, 1]} : vector<1x384xf32> to vector<1x128xf32>
    %168 = arith.addf %166, %167 : vector<1x128xf32>
    %169 = arith.negf %168 : vector<1x128xf32>
    %170 = math.exp %169 : vector<1x128xf32>
    %cst_37 = arith.constant 1.000000e+00 : f32
    %171 = vector.broadcast %cst_37 : f32 to vector<1x128xf32>
    %172 = arith.addf %171, %170 : vector<1x128xf32>
    %173 = arith.divf %171, %172 : vector<1x128xf32>
    %174 = vector.extract_strided_slice %165 {offsets = [0, 128], sizes = [1, 128], strides = [1, 1]} : vector<1x384xf32> to vector<1x128xf32>
    %175 = vector.extract_strided_slice %164 {offsets = [0, 128], sizes = [1, 128], strides = [1, 1]} : vector<1x384xf32> to vector<1x128xf32>
    %176 = arith.addf %174, %175 : vector<1x128xf32>
    %177 = arith.negf %176 : vector<1x128xf32>
    %178 = math.exp %177 : vector<1x128xf32>
    %cst_38 = arith.constant 1.000000e+00 : f32
    %179 = vector.broadcast %cst_38 : f32 to vector<1x128xf32>
    %180 = arith.addf %179, %178 : vector<1x128xf32>
    %181 = arith.divf %179, %180 : vector<1x128xf32>
    %182 = vector.extract_strided_slice %165 {offsets = [0, 256], sizes = [1, 128], strides = [1, 1]} : vector<1x384xf32> to vector<1x128xf32>
    %183 = vector.extract_strided_slice %164 {offsets = [0, 256], sizes = [1, 128], strides = [1, 1]} : vector<1x384xf32> to vector<1x128xf32>
    %184 = arith.mulf %173, %183 : vector<1x128xf32>
    %185 = arith.addf %182, %184 : vector<1x128xf32>
    %186 = math.tanh %185 : vector<1x128xf32>
    %cst_39 = arith.constant 1.000000e+00 : f32
    %187 = vector.broadcast %cst_39 : f32 to vector<1x128xf32>
    %188 = arith.subf %187, %181 : vector<1x128xf32>
    %189 = arith.mulf %188, %186 : vector<1x128xf32>
    %190 = arith.mulf %181, %160 : vector<1x128xf32>
    %191 = arith.addf %189, %190 : vector<1x128xf32>
    %c2 = arith.constant 2 : index
    %c0_40 = arith.constant 0 : index
    %192 = vector.load %arg9[%c2, %c0_40] : memref<8x128xf32, #tpu.memory_space<vmem>>, vector<1x128xf32>
    tpu.vector_store %arg9[%c2, %c0_40], %191 {strides = array<i32>} : memref<8x128xf32, #tpu.memory_space<vmem>>, vector<1x128xf32>,
    %cst_41 = arith.constant dense<0.000000e+00> : vector<1x768xf32>
    %193 = tpu.matmul %191, %5, %cst_41 {dimension_numbers = #tpu.dot_dimension_numbers<[1], [0], [0], [1], [0, 0, 1, 1], [], []>} : vector<1x128xf32>, vector<128x768xf32>, vector<1x768xf32> -> vector<1x768xf32>
    %194 = arith.addf %193, %6 : vector<1x768xf32>
    %195 = vector.extract_strided_slice %194 {offsets = [0, 0], sizes = [1, 384], strides = [1, 1]} : vector<1x768xf32> to vector<1x384xf32>
    %196 = vector.extract_strided_slice %194 {offsets = [0, 384], sizes = [1, 384], strides = [1, 1]} : vector<1x768xf32> to vector<1x384xf32>
    %197 = vector.extract_strided_slice %196 {offsets = [0, 0], sizes = [1, 128], strides = [1, 1]} : vector<1x384xf32> to vector<1x128xf32>
    %198 = vector.extract_strided_slice %195 {offsets = [0, 0], sizes = [1, 128], strides = [1, 1]} : vector<1x384xf32> to vector<1x128xf32>
    %199 = arith.addf %197, %198 : vector<1x128xf32>
    %200 = arith.negf %199 : vector<1x128xf32>
    %201 = math.exp %200 : vector<1x128xf32>
    %cst_42 = arith.constant 1.000000e+00 : f32
    %202 = vector.broadcast %cst_42 : f32 to vector<1x128xf32>
    %203 = arith.addf %202, %201 : vector<1x128xf32>
    %204 = arith.divf %202, %203 : vector<1x128xf32>
    %205 = vector.extract_strided_slice %196 {offsets = [0, 128], sizes = [1, 128], strides = [1, 1]} : vector<1x384xf32> to vector<1x128xf32>
    %206 = vector.extract_strided_slice %195 {offsets = [0, 128], sizes = [1, 128], strides = [1, 1]} : vector<1x384xf32> to vector<1x128xf32>
    %207 = arith.addf %205, %206 : vector<1x128xf32>
    %208 = arith.negf %207 : vector<1x128xf32>
    %209 = math.exp %208 : vector<1x128xf32>
    %cst_43 = arith.constant 1.000000e+00 : f32
    %210 = vector.broadcast %cst_43 : f32 to vector<1x128xf32>
    %211 = arith.addf %210, %209 : vector<1x128xf32>
    %212 = arith.divf %210, %211 : vector<1x128xf32>
    %213 = vector.extract_strided_slice %196 {offsets = [0, 256], sizes = [1, 128], strides = [1, 1]} : vector<1x384xf32> to vector<1x128xf32>
    %214 = vector.extract_strided_slice %195 {offsets = [0, 256], sizes = [1, 128], strides = [1, 1]} : vector<1x384xf32> to vector<1x128xf32>
    %215 = arith.mulf %204, %214 : vector<1x128xf32>
    %216 = arith.addf %213, %215 : vector<1x128xf32>
    %217 = math.tanh %216 : vector<1x128xf32>
    %cst_44 = arith.constant 1.000000e+00 : f32
    %218 = vector.broadcast %cst_44 : f32 to vector<1x128xf32>
    %219 = arith.subf %218, %212 : vector<1x128xf32>
    %220 = arith.mulf %219, %217 : vector<1x128xf32>
    %221 = arith.mulf %212, %191 : vector<1x128xf32>
    %222 = arith.addf %220, %221 : vector<1x128xf32>
    %c1 = arith.constant 1 : index
    %c0_45 = arith.constant 0 : index
    %223 = vector.load %arg9[%c1, %c0_45] : memref<8x128xf32, #tpu.memory_space<vmem>>, vector<1x128xf32>
    tpu.vector_store %arg9[%c1, %c0_45], %222 {strides = array<i32>} : memref<8x128xf32, #tpu.memory_space<vmem>>, vector<1x128xf32>,
    %cst_46 = arith.constant dense<0.000000e+00> : vector<1x768xf32>
    %224 = tpu.matmul %222, %5, %cst_46 {dimension_numbers = #tpu.dot_dimension_numbers<[1], [0], [0], [1], [0, 0, 1, 1], [], []>} : vector<1x128xf32>, vector<128x768xf32>, vector<1x768xf32> -> vector<1x768xf32>
    %225 = arith.addf %224, %6 : vector<1x768xf32>
    %226 = vector.extract_strided_slice %225 {offsets = [0, 0], sizes = [1, 384], strides = [1, 1]} : vector<1x768xf32> to vector<1x384xf32>
    %227 = vector.extract_strided_slice %225 {offsets = [0, 384], sizes = [1, 384], strides = [1, 1]} : vector<1x768xf32> to vector<1x384xf32>
    %228 = vector.extract_strided_slice %227 {offsets = [0, 0], sizes = [1, 128], strides = [1, 1]} : vector<1x384xf32> to vector<1x128xf32>
    %229 = vector.extract_strided_slice %226 {offsets = [0, 0], sizes = [1, 128], strides = [1, 1]} : vector<1x384xf32> to vector<1x128xf32>
    %230 = arith.addf %228, %229 : vector<1x128xf32>
    %231 = arith.negf %230 : vector<1x128xf32>
    %232 = math.exp %231 : vector<1x128xf32>
    %cst_47 = arith.constant 1.000000e+00 : f32
    %233 = vector.broadcast %cst_47 : f32 to vector<1x128xf32>
    %234 = arith.addf %233, %232 : vector<1x128xf32>
    %235 = arith.divf %233, %234 : vector<1x128xf32>
    %236 = vector.extract_strided_slice %227 {offsets = [0, 128], sizes = [1, 128], strides = [1, 1]} : vector<1x384xf32> to vector<1x128xf32>
    %237 = vector.extract_strided_slice %226 {offsets = [0, 128], sizes = [1, 128], strides = [1, 1]} : vector<1x384xf32> to vector<1x128xf32>
    %238 = arith.addf %236, %237 : vector<1x128xf32>
    %239 = arith.negf %238 : vector<1x128xf32>
    %240 = math.exp %239 : vector<1x128xf32>
    %cst_48 = arith.constant 1.000000e+00 : f32
    %241 = vector.broadcast %cst_48 : f32 to vector<1x128xf32>
    %242 = arith.addf %241, %240 : vector<1x128xf32>
    %243 = arith.divf %241, %242 : vector<1x128xf32>
    %244 = vector.extract_strided_slice %227 {offsets = [0, 256], sizes = [1, 128], strides = [1, 1]} : vector<1x384xf32> to vector<1x128xf32>
    %245 = vector.extract_strided_slice %226 {offsets = [0, 256], sizes = [1, 128], strides = [1, 1]} : vector<1x384xf32> to vector<1x128xf32>
    %246 = arith.mulf %235, %245 : vector<1x128xf32>
    %247 = arith.addf %244, %246 : vector<1x128xf32>
    %248 = math.tanh %247 : vector<1x128xf32>
    %cst_49 = arith.constant 1.000000e+00 : f32
    %249 = vector.broadcast %cst_49 : f32 to vector<1x128xf32>
    %250 = arith.subf %249, %243 : vector<1x128xf32>
    %251 = arith.mulf %250, %248 : vector<1x128xf32>
    %252 = arith.mulf %243, %222 : vector<1x128xf32>
    %253 = arith.addf %251, %252 : vector<1x128xf32>
    %c0_50 = arith.constant 0 : index
    %c0_51 = arith.constant 0 : index
    %254 = vector.load %arg9[%c0_50, %c0_51] : memref<8x128xf32, #tpu.memory_space<vmem>>, vector<1x128xf32>
    tpu.vector_store %arg9[%c0_50, %c0_51], %253 {strides = array<i32>} : memref<8x128xf32, #tpu.memory_space<vmem>>, vector<1x128xf32>,
    %c0_52 = arith.constant 0 : index
    %c0_53 = arith.constant 0 : index
    %255 = vector.load %arg9[%c0_52, %c0_53] : memref<8x128xf32, #tpu.memory_space<vmem>>, vector<8x128xf32>
    %c0_54 = arith.constant 0 : index
    %c0_55 = arith.constant 0 : index
    %256 = vector.load %arg6[%c0_54, %c0_55] : memref<128x128xf32, #tpu.memory_space<vmem>>, vector<128x128xf32>
    %cst_56 = arith.constant dense<0.000000e+00> : vector<8x128xf32>
    %257 = tpu.matmul %255, %256, %cst_56 {dimension_numbers = #tpu.dot_dimension_numbers<[1], [0], [0], [1], [0, 0, 1, 1], [], []>} : vector<8x128xf32>, vector<128x128xf32>, vector<8x128xf32> -> vector<8x128xf32>
    %c0_57 = arith.constant 0 : index
    %c0_58 = arith.constant 0 : index
    %258 = vector.load %arg7[%c0_57, %c0_58] : memref<1x128xf32, #tpu.memory_space<vmem>>, vector<1x128xf32>
    %259 = vector.broadcast %258 : vector<1x128xf32> to vector<8x128xf32>
    %260 = arith.addf %257, %259 : vector<8x128xf32>
    %c0_59 = arith.constant 0 : index
    %c0_60 = arith.constant 0 : index
    %261 = vector.load %arg8[%c0_59, %c0_60] : memref<8x128xf32, #tpu.memory_space<vmem>>, vector<8x128xf32>
    tpu.vector_store %arg8[%c0_59, %c0_60], %260 {strides = array<i32>} : memref<8x128xf32, #tpu.memory_space<vmem>>, vector<8x128xf32>,
    return
  }
}

</mosaic_0001>

<bundles_post_ra>
// kernel: tpu_custom_call.1
= control target key start
LH: loop header
LB: loop body
LE: loop exit
PB: predicated region body
PF: predicated region fallthrough
CT: control target
= control target key end

     0   :  { %13 = vsyncpa [#allocation4], 0  ;;  %s4260_s0 = inlined_call_operand.hbm [shape: f32[1,128], index: 0, kind: input, shape index: {}]   ;;  %s4261_s1 = inlined_call_operand.vmem [shape: f32[1,128], index: 1, kind: input, shape index: {}]   ;;  %s4262_s2 = inlined_call_operand.hbm [shape: f32[128,384], index: 2, kind: input, shape index: {}]   ;;  %s4263_s3 = inlined_call_operand.vmem [shape: f32[1,384], index: 3, kind: input, shape index: {}]   ;;  %s4264_s4 = inlined_call_operand.hbm [shape: f32[128,768], index: 4, kind: input, shape index: {}]   ;;  %s4265_s5 = inlined_call_operand.vmem [shape: f32[1,768], index: 5, kind: input, shape index: {}]   ;;  %s4266_s6 = inlined_call_operand.hbm [shape: f32[128,128], index: 6, kind: input, shape index: {}]   ;;  %s4267_s7 = inlined_call_operand.vmem [shape: f32[1,128], index: 7, kind: input, shape index: {}]   ;;  %s4268_s8 = inlined_call_operand.hbm [shape: f32[8,128], index: 8, kind: output, shape index: {}]  }
   0x1   :  { %14 = vsyncpa [#allocation7], 0 }
   0x2   :  { %15 = vsyncpa [#allocation10], 0 }
   0x3   :  { %16 = vsyncpa [#allocation5], 0  ;;  %s3494_s27 = smov [#allocation6]   ;;  %s3376_s9 = scalar_lea.hbm %s4262_s2, 6144 }
   0x4   :  { %s34_s28 = sshll.u32 %s3494_s27, 4  ;;  %p3377_p0 = scmp.ne.s32.totalorder %s4262_s2, %s3376_s9  ;;  %s35_s28 = int_to_ptr.vmem [resolvable:$true] %s34_s28 }
   0x5   :  { %p3380_p1 = scmp.lt.u32.totalorder %s3376_s9, %s4262_s2 }
   0x7   :  { %p3382_p2 = pnand %p3380_p1, %p3377_p0 }
   0x9   :  { %3385 = shalt.err (!%p3382_p2)
}
   0xa   :  { %s3386_s14 = scalar_lea.vmem %s35_s28, 6144  ;;  %p3391_p4 = scmp.lt.s32.totalorder %s35_s28, %s35_s28 }
   0xb   :  { %p3387_p3 = scmp.ne.s32.totalorder %s35_s28, %s3386_s14  ;;  %p3392_p5 = scmp.lt.s32.totalorder %s3386_s14, %s3386_s14 }
   0xd   :  { %p3393_p6 = por %p3392_p5, %p3391_p4 }
   0xf   :  { %p3394_p7 = pnand %p3393_p6, %p3387_p3 }
  0x11   :  { %3397 = shalt.err (!%p3394_p7)
}
  0x12   :  { %s3495_s15 = smov 384   ;;  %s3496_s16 = smov 24  }
  0x13   :  { %40 = dma.hbm_to_vmem [thread:$0]  %s4262_s2, 6144, %s35_s28, [#allocation7], %s3495_s15, %s3495_s15, %s3496_s16  }
  0x14   :  { %s3497_s19 = smov [#allocation3]   ;;  %s3498_s21 = smov [#allocation8]  }
  0x15   :  { %s23_s20 = sshll.u32 %s3497_s19, 4  ;;  %s48_s22 = sshll.u32 %s3498_s21, 4  ;;  %s24_s20 = int_to_ptr.vmem [resolvable:$true] %s23_s20  ;;  %s49_s22 = int_to_ptr.vmem [resolvable:$true] %s48_s22 }
  0x16   :  { %s3398_s25 = scalar_lea.hbm %s4260_s0, 16 }
  0x17   :  { %p3399_p8 = scmp.ne.s32.totalorder %s4260_s0, %s3398_s25  ;;  %p3402_p9 = scmp.lt.u32.totalorder %s3398_s25, %s4260_s0 }
  0x19   :  { %p3404_p10 = pnand %p3402_p9, %p3399_p8 }
  0x1b   :  { %3407 = shalt.err (!%p3404_p10)
}
  0x1c   :  { %s3408_s2 = scalar_lea.vmem %s24_s20, 16  ;;  %s3412_s28 = scalar_lea.vmem %s24_s20, 32 }
  0x1d   :  { %p3409_p11 = scmp.ne.s32.totalorder %s24_s20, %s3408_s2  ;;  %p3413_p12 = scmp.lt.s32.totalorder %s24_s20, %s24_s20 }
  0x1e   :  { %p3414_p13 = scmp.lt.s32.totalorder %s3412_s28, %s3408_s2 }
  0x20   :  { %p3415_p0 = por %p3414_p13, %p3413_p12 }
  0x22   :  { %p3416_p1 = pnand %p3415_p0, %p3409_p11 }
  0x24   :  { %3419 = shalt.err (!%p3416_p1)
}
  0x25   :  { %26 = dma.hbm_to_vmem [thread:$0]  %s4260_s0, 16, %s24_s20, [#allocation4]  }
  0x26   :  { %s3420_s13 = scalar_lea.hbm %s4264_s4, 12288 }
  0x27   :  { %p3421_p2 = scmp.ne.s32.totalorder %s4264_s4, %s3420_s13  ;;  %p3424_p3 = scmp.lt.u32.totalorder %s3420_s13, %s4264_s4 }
  0x29   :  { %p3426_p4 = pnand %p3424_p3, %p3421_p2 }
  0x2b   :  { %3429 = shalt.err (!%p3426_p4)
}
  0x2c   :  { %s3430_s18 = scalar_lea.vmem %s49_s22, 12288  ;;  %p3435_p6 = scmp.lt.s32.totalorder %s49_s22, %s49_s22 }
  0x2d   :  { %p3431_p5 = scmp.ne.s32.totalorder %s49_s22, %s3430_s18  ;;  %p3436_p7 = scmp.lt.s32.totalorder %s3430_s18, %s3430_s18 }
  0x2f   :  { %p3437_p8 = por %p3436_p7, %p3435_p6 }
  0x31   :  { %p3438_p9 = pnand %p3437_p8, %p3431_p5 }
  0x33   :  { %3441 = shalt.err (!%p3438_p9)
}
  0x34   :  { %s3499_s0 = smov 768   ;;  %s3500_s19 = smov 48  }
  0x35   :  { %54 = dma.hbm_to_vmem [thread:$0]  %s4264_s4, 12288, %s49_s22, [#allocation7], %s3499_s0, %s3499_s0, %s3500_s19  }
  0x36   :  { %s3501_s23 = smov [#allocation9]   ;;  %s3442_s27 = scalar_lea.hbm %s4266_s6, 2048 }
  0x37   :  { %s62_s24 = sshll.u32 %s3501_s23, 4  ;;  %p3443_p10 = scmp.ne.s32.totalorder %s4266_s6, %s3442_s27  ;;  %s63_s24 = int_to_ptr.vmem [resolvable:$true] %s62_s24 }
  0x38   :  { %p3446_p11 = scmp.lt.u32.totalorder %s3442_s27, %s4266_s6 }
  0x3a   :  { %p3448_p12 = pnand %p3446_p11, %p3443_p10 }
  0x3c   :  { %3451 = shalt.err (!%p3448_p12)
}
  0x3d   :  { %s3452_s9 = scalar_lea.vmem %s63_s24, 2048  ;;  %p3457_p0 = scmp.lt.s32.totalorder %s63_s24, %s63_s24 }
  0x3e   :  { %p3453_p13 = scmp.ne.s32.totalorder %s63_s24, %s3452_s9  ;;  %p3458_p1 = scmp.lt.s32.totalorder %s3452_s9, %s3452_s9 }
  0x40   :  { %p3459_p2 = por %p3458_p1, %p3457_p0 }
  0x42   :  { %p3460_p3 = pnand %p3459_p2, %p3453_p13 }
  0x44   :  { %3463 = shalt.err (!%p3460_p3)
}
  0x45   :  { %s3502_s4 = smov 128   ;;  %s3503_s22 = smov 8  }
  0x46   :  { %68 = dma.hbm_to_vmem [thread:$0]  %s4266_s6, 2048, %s63_s24, [#allocation10], %s3502_s4, %s3502_s4, %s3503_s22  }
  0x47   :  { %3486 = dma.done.wait [#allocation4], 16  }
  0x48   :  { %3487 = vsyncadd [#allocation4], 4294967280 }
  0x49   :  { %3488 = dma.done.wait [#allocation7], 18432  }
  0x4a   :  { %3489 = vsyncadd [#allocation7], 4294948864 }
  0x4b   :  { %3490 = dma.done.wait [#allocation10], 2048  }
  0x4c   :  { %3491 = vsyncadd [#allocation10], 4294965248  ;;  %v4269_v0 = vmov 0.0|0.0   ;;  %v4271_v1 = vmov 0.0   ;;  %vm3506_vm0 = vmmov 0   ;;  %v85_v2 = vld [vmem:[#allocation6 + $0x8] sm:$0xff] }
  0x4d   :  { %2492 = vmatprep.subr.bf16.mxu1 %v4269_v0  ;;  %213 = vmatprep.mubr.f32.mxu0 %v4271_v1  ;;  %v88_v3 = vld [vmem:[#allocation6 + $0x20] sm:$0xff]  ;;  %v87_v6 = vld [vmem:[#allocation6 + $0x18] sm:$0xff]  ;;  %v94_v8 = vld [vmem:[#allocation6 + $0x50] sm:$0xff]  ;;  %s3507_s16 = smov [#allocation11]  }
  0x4e   :  { %2422 = vmatprep.mubr.msk.f32.mxu1 %vm3506_vm0, %v4271_v1  ;;  %v84_v4 = vld [vmem:[#allocation6] sm:$0xff]  ;;  %v2460_v5 = vpack.c.bf16 %v88_v3, %v85_v2  ;;  %v91_v7 = vld [vmem:[#allocation6 + $0x38] sm:$0xff]  ;;  %v90_v11 = vld [vmem:[#allocation6 + $0x30] sm:$0xff]  ;;  %s2328_s17 = sshll.u32 %s3507_s16, 4  ;;  %s2329_s17 = int_to_ptr.vmem [resolvable:$true] %s2328_s17 }
  0x4f   :  { %v2462_v9 = vpack.c.bf16 %v87_v6, %v84_v4  ;;  %v2464_v10 = vpack.c.bf16 %v94_v8, %v91_v7  ;;  %v93_v12 = vld [vmem:[#allocation6 + $0x48] sm:$0xff]  ;;  %v100_v14 = vld [vmem:[#allocation6 + $0x80] sm:$0xff]  ;;  %v99_v18 = vld [vmem:[#allocation6 + $0x78] sm:$0xff]  ;;  %s3464_s18 = scalar_lea.vmem %s2329_s17, 128  ;;  %p3469_p5 = scmp.lt.s32.totalorder %s2329_s17, %s2329_s17 }
  0x50   :  { %v97_v13 = vld [vmem:[#allocation6 + $0x68] sm:$0xff]  ;;  %2461 = vmatprep.subr.bf16.mxu0 %v2460_v5  ;;  %v2466_v15 = vpack.c.bf16 %v93_v12, %v90_v11  ;;  %v96_v17 = vld [vmem:[#allocation6 + $0x60] sm:$0xff]  ;;  %v103_v19 = vld [vmem:[#allocation6 + $0x98] sm:$0xff]  ;;  %p3465_p4 = scmp.ne.s32.totalorder %s2329_s17, %s3464_s18  ;;  %p3470_p6 = scmp.lt.s32.totalorder %s3464_s18, %s3464_s18 }
  0x51   :  { %2463 = vmatpush1.bf16.msra.mxu0 %v2462_v9  ;;  %v2468_v16 = vpack.c.bf16 %v100_v14, %v97_v13  ;;  %v106_v20 = vld [vmem:[#allocation6 + $0xb0] sm:$0xff]  ;;  %v2470_v21 = vpack.c.bf16 %v99_v18, %v96_v17  ;;  %v105_v24 = vld [vmem:[#allocation6 + $0xa8] sm:$0xff]  ;;  %v112_v28 = vld [vmem:[#allocation6 + $0xe0] sm:$0xff] }
  0x52   :  { %2465 = vmatprep.subr.bf16.mxu0 %v2464_v10  ;;  %v102_v22 = vld [vmem:[#allocation6 + $0x90] sm:$0xff]  ;;  %v2472_v23 = vpack.c.bf16 %v106_v20, %v103_v19  ;;  %v89_v26 = vld [vmem:[#allocation6 + $0x28] sm:$0xff]  ;;  %v92_v30 = vld [vmem:[#allocation6 + $0x40] sm:$0xff]  ;;  %p3471_p7 = por %p3470_p6, %p3469_p5 }
  0x53   :  { %v86_v25 = vld [vmem:[#allocation6 + $0x10] sm:$0xff]  ;;  %v109_v27 = vld [vmem:[#allocation6 + $0xc8] sm:$0xff]  ;;  %v95_v31 = vld [vmem:[#allocation6 + $0x58] sm:$0xff]  ;;  %v2474_v32 = vpack.c.bf16 %v105_v24, %v102_v22 }
  0x54   :  { %v2493_v29 = vpack.c.bf16 %v89_v26, %v86_v25  ;;  %v2496_v33 = vpack.c.bf16 %v95_v31, %v92_v30  ;;  %v2476_v34 = vpack.c.bf16 %v112_v28, %v109_v27  ;;  %v108_v35 = vld [vmem:[#allocation6 + $0xc0] sm:$0xff]  ;;  %v111_v36 = vld [vmem:[#allocation6 + $0xd8] sm:$0xff]  ;;  %v98_v37 = vld [vmem:[#allocation6 + $0x70] sm:$0xff]  ;;  %p3472_p8 = pnand %p3471_p7, %p3465_p4 }
  0x55   :  { %2467 = vmatpush1.bf16.msra.mxu0 %v2466_v15  ;;  %v115_v38 = vld [vmem:[#allocation6 + $0xf8] sm:$0xff]  ;;  %v118_v39 = vld [vmem:[#allocation6 + $0x110] sm:$0xff]  ;;  %v101_v40 = vld [vmem:[#allocation6 + $0x88] sm:$0xff]  ;;  %v2478_v41 = vpack.c.bf16 %v111_v36, %v108_v35 }
  0x56   :  { %2469 = vmatprep.subr.bf16.mxu0 %v2468_v16  ;;  %2494 = vmatpush3.bf16.msra.mxu1 %v2493_v29  ;;  %v114_v42 = vld [vmem:[#allocation6 + $0xf0] sm:$0xff]  ;;  %v2499_v43 = vpack.c.bf16 %v101_v40, %v98_v37  ;;  %v2480_v44 = vpack.c.bf16 %v118_v39, %v115_v38  ;;  %v117_v45 = vld [vmem:[#allocation6 + $0x108] sm:$0xff]  ;;  %v104_v46 = vld [vmem:[#allocation6 + $0xa0] sm:$0xff] }
  0x57   :  { %2495 = vmatprep.subr.bf16.mxu1 %v4269_v0  ;;  %v107_v47 = vld [vmem:[#allocation6 + $0xb8] sm:$0xff]  ;;  %v121_v48 = vld [vmem:[#allocation6 + $0x128] sm:$0xff]  ;;  %v124_v49 = vld [vmem:[#allocation6 + $0x140] sm:$0xff]  ;;  %v2482_v50 = vpack.c.bf16 %v117_v45, %v114_v42 }
  0x58   :  { %v120_v51 = vld [vmem:[#allocation6 + $0x120] sm:$0xff]  ;;  %v2502_v52 = vpack.c.bf16 %v107_v47, %v104_v46  ;;  %v2484_v53 = vpack.c.bf16 %v124_v49, %v121_v48  ;;  %v123_v54 = vld [vmem:[#allocation6 + $0x138] sm:$0xff]  ;;  %v110_v55 = vld [vmem:[#allocation6 + $0xd0] sm:$0xff] }
  0x59   :  { %2471 = vmatpush1.bf16.msra.mxu0 %v2470_v21  ;;  %v113_v56 = vld [vmem:[#allocation6 + $0xe8] sm:$0xff]  ;;  %v127_v57 = vld [vmem:[#allocation6 + $0x158] sm:$0xff]  ;;  %v130_v58 = vld [vmem:[#allocation6 + $0x170] sm:$0xff]  ;;  %v2486_v59 = vpack.c.bf16 %v123_v54, %v120_v51 }
  0x5a   :  { %2473 = vmatprep.subr.bf16.mxu0 %v2472_v23  ;;  %2497 = vmatpush3.bf16.msra.mxu1 %v2496_v33  ;;  %v126_v60 = vld [vmem:[#allocation6 + $0x150] sm:$0xff]  ;;  %v2505_v61 = vpack.c.bf16 %v113_v56, %v110_v55  ;;  %v2488_v62 = vpack.c.bf16 %v130_v58, %v127_v57  ;;  %v129_v63 = vld [vmem:[#allocation6 + $0x168] sm:$0xff]  ;;  %v116_v2 = vld [vmem:[#allocation6 + $0x100] sm:$0xff] }
  0x5b   :  { %2498 = vmatprep.subr.bf16.mxu1 %v4269_v0  ;;  %v119_v3 = vld [vmem:[#allocation6 + $0x118] sm:$0xff]  ;;  %v291_v4 = vld [vmem:[#allocation8 + $0x8] sm:$0xff]  ;;  %v2490_v6 = vpack.c.bf16 %v129_v63, %v126_v60  ;;  %v290_v7 = vld [vmem:[#allocation8] sm:$0xff] }
  0x5c   :  { %v297_v5 = vld [vmem:[#allocation8 + $0x38] sm:$0xff]  ;;  %v2508_v8 = vpack.c.bf16 %v119_v3, %v116_v2  ;;  %v296_v10 = vld [vmem:[#allocation8 + $0x30] sm:$0xff]  ;;  %v125_v12 = vld [vmem:[#allocation6 + $0x148] sm:$0xff] }
  0x5d   :  { %2475 = vmatpush1.bf16.msra.mxu0 %v2474_v32  ;;  %v3609_v9 = vpack.c.bf16 %v297_v5, %v291_v4  ;;  %v122_v11 = vld [vmem:[#allocation6 + $0x130] sm:$0xff]  ;;  %v303_v13 = vld [vmem:[#allocation8 + $0x68] sm:$0xff]  ;;  %v309_v14 = vld [vmem:[#allocation8 + $0x98] sm:$0xff]  ;;  %v3612_v16 = vpack.c.bf16 %v296_v10, %v290_v7 }
  0x5e   :  { %2477 = vmatprep.subr.bf16.mxu0 %v2476_v34  ;;  %2500 = vmatpush3.bf16.msra.mxu1 %v2499_v43  ;;  %v83_v15 = vld [vmem:[#allocation3] sm:$0x1]  ;;  %v302_v17 = vld [vmem:[#allocation8 + $0x60] sm:$0xff]  ;;  %v308_v18 = vld [vmem:[#allocation8 + $0x90] sm:$0xff]  ;;  %v2511_v19 = vpack.c.bf16 %v125_v12, %v122_v11  ;;  %v3615_v20 = vpack.c.bf16 %v309_v14, %v303_v13 }
  0x5f   :  { %2501 = vmatprep.subr.bf16.mxu1 %v4269_v0  ;;  %4297 = vst [vmem:[#allocation16_spill] sm:$0xff] %v3609_v9  ;;  %v315_v21 = vld [vmem:[#allocation8 + $0xc8] sm:$0xff]  ;;  %v128_v22 = vld [vmem:[#allocation6 + $0x160] sm:$0xff]  ;;  %v131_v23 = vld [vmem:[#allocation6 + $0x178] sm:$0xff]  ;;  %v3619_v27 = vpack.c.bf16 %v308_v18, %v302_v17 }
  0x60   :  { %v321_v24 = vld [vmem:[#allocation8 + $0xf8] sm:$0xff]  ;;  %v299_v26 = vld [vmem:[#allocation8 + $0x48] sm:$0xff]  ;;  %v314_v28 = vld [vmem:[#allocation8 + $0xc0] sm:$0xff]  ;;  %v2514_v30 = vpack.c.bf16 %v131_v23, %v128_v22 }
  0x61   :  { %2479 = vmatpush1.bf16.msra.mxu0 %v2478_v41  ;;  %v293_v25 = vld [vmem:[#allocation8 + $0x18] sm:$0xff]  ;;  %v320_v29 = vld [vmem:[#allocation8 + $0xf0] sm:$0xff]  ;;  %v3622_v31 = vpack.c.bf16 %v321_v24, %v315_v21  ;;  %v327_v32 = vld [vmem:[#allocation8 + $0x128] sm:$0xff] }
  0x62   :  { %2481 = vmatprep.subr.bf16.mxu0 %v2480_v44  ;;  %2503 = vmatpush3.bf16.msra.mxu1 %v2502_v52  ;;  %v3625_v33 = vpack.c.bf16 %v299_v26, %v293_v25  ;;  %v292_v34 = vld [vmem:[#allocation8 + $0x10] sm:$0xff]  ;;  %v298_v35 = vld [vmem:[#allocation8 + $0x40] sm:$0xff]  ;;  %v333_v36 = vld [vmem:[#allocation8 + $0x158] sm:$0xff]  ;;  %v3629_v39 = vpack.c.bf16 %v320_v29, %v314_v28 }
  0x63   :  { %2504 = vmatprep.subr.bf16.mxu1 %v4269_v0  ;;  %v305_v37 = vld [vmem:[#allocation8 + $0x78] sm:$0xff]  ;;  %v311_v38 = vld [vmem:[#allocation8 + $0xa8] sm:$0xff]  ;;  %v326_v40 = vld [vmem:[#allocation8 + $0x120] sm:$0xff]  ;;  %v3631_v42 = vpack.c.bf16 %v298_v35, %v292_v34  ;;  %v3634_v43 = vpack.c.bf16 %v333_v36, %v327_v32 }
  0x64   :  { %v332_v41 = vld [vmem:[#allocation8 + $0x150] sm:$0xff]  ;;  %v339_v44 = vld [vmem:[#allocation8 + $0x188] sm:$0xff]  ;;  %v3637_v45 = vpack.c.bf16 %v311_v38, %v305_v37  ;;  %v310_v47 = vld [vmem:[#allocation8 + $0xa0] sm:$0xff] }
  0x65   :  { %2483 = vmatpush1.bf16.msra.mxu0 %v2482_v50  ;;  %v304_v46 = vld [vmem:[#allocation8 + $0x70] sm:$0xff]  ;;  %v345_v48 = vld [vmem:[#allocation8 + $0x1b8] sm:$0xff]  ;;  %v323_v50 = vld [vmem:[#allocation8 + $0x108] sm:$0xff]  ;;  %v3640_v51 = vpack.c.bf16 %v332_v41, %v326_v40 }
  0x66   :  { %2485 = vmatprep.subr.bf16.mxu0 %v2484_v53  ;;  %2506 = vmatpush3.bf16.msra.mxu1 %v2505_v61  ;;  %v317_v49 = vld [vmem:[#allocation8 + $0xd8] sm:$0xff]  ;;  %v338_v52 = vld [vmem:[#allocation8 + $0x180] sm:$0xff]  ;;  %v344_v53 = vld [vmem:[#allocation8 + $0x1b0] sm:$0xff]  ;;  %v3643_v54 = vpack.c.bf16 %v310_v47, %v304_v46  ;;  %v3646_v55 = vpack.c.bf16 %v345_v48, %v339_v44 }
  0x67   :  { %2507 = vmatprep.subr.bf16.mxu1 %v4269_v0  ;;  %v351_v56 = vld [vmem:[#allocation8 + $0x1e8] sm:$0xff]  ;;  %v3649_v57 = vpack.c.bf16 %v323_v50, %v317_v49  ;;  %v316_v58 = vld [vmem:[#allocation8 + $0xd0] sm:$0xff]  ;;  %v357_v60 = vld [vmem:[#allocation8 + $0x218] sm:$0xff]  ;;  %v3653_v63 = vpack.c.bf16 %v344_v53, %v338_v52 }
  0x68   :  { %v329_v61 = vld [vmem:[#allocation8 + $0x138] sm:$0xff]  ;;  %v350_v2 = vld [vmem:[#allocation8 + $0x1e0] sm:$0xff]  ;;  %v356_v3 = vld [vmem:[#allocation8 + $0x210] sm:$0xff]  ;;  %v3659_v5 = vpack.c.bf16 %v357_v60, %v351_v56 }
  0x69   :  { %2487 = vmatpush1.bf16.msra.mxu0 %v2486_v59  ;;  %v322_v59 = vld [vmem:[#allocation8 + $0x100] sm:$0xff]  ;;  %v369_v11 = vld [vmem:[#allocation8 + $0x278] sm:$0xff]  ;;  %v347_v13 = vld [vmem:[#allocation8 + $0x1c8] sm:$0xff]  ;;  %v3665_v14 = vpack.c.bf16 %v356_v3, %v350_v2 }
  0x6a   :  { %2489 = vmatprep.subr.bf16.mxu0 %v2488_v62  ;;  %2509 = vmatpush3.bf16.msra.mxu1 %v2508_v8  ;;  %v335_v62 = vld [vmem:[#allocation8 + $0x168] sm:$0xff]  ;;  %v3656_v4 = vpack.c.bf16 %v322_v59, %v316_v58  ;;  %v328_v8 = vld [vmem:[#allocation8 + $0x130] sm:$0xff]  ;;  %v334_v10 = vld [vmem:[#allocation8 + $0x160] sm:$0xff] }
  0x6b   :  { %2510 = vmatprep.subr.bf16.mxu1 %v4269_v0  ;;  %v3662_v7 = vpack.c.bf16 %v335_v62, %v329_v61  ;;  %v341_v12 = vld [vmem:[#allocation8 + $0x198] sm:$0xff]  ;;  %v368_v17 = vld [vmem:[#allocation8 + $0x270] sm:$0xff]  ;;  %v3668_v18 = vpack.c.bf16 %v334_v10, %v328_v8  ;;  %v375_v21 = vld [vmem:[#allocation8 + $0x2a8] sm:$0xff]  ;;  %v134_v10 = vlaneseq }
  0x6c   :  { %v3674_v22 = vpack.c.bf16 %v347_v13, %v341_v12  ;;  %v340_v23 = vld [vmem:[#allocation8 + $0x190] sm:$0xff]  ;;  %v346_v24 = vld [vmem:[#allocation8 + $0x1c0] sm:$0xff]  ;;  %v381_v25 = vld [vmem:[#allocation8 + $0x2d8] sm:$0xff] }
  0x6d   :  { %2491 = vmatpush1.bf16.msra.mxu0 %v2490_v6  ;;  %v363_v6 = vld [vmem:[#allocation8 + $0x248] sm:$0xff]  ;;  %v353_v26 = vld [vmem:[#allocation8 + $0x1f8] sm:$0xff]  ;;  %v3680_v32 = vpack.c.bf16 %v346_v24, %v340_v23  ;;  %v3683_v34 = vpack.c.bf16 %v381_v25, %v375_v21  ;;  %v380_v35 = vld [vmem:[#allocation8 + $0x2d0] sm:$0xff] }
  0x6e   :  { %2517 = vmatprep.subr.bf16.mxu0 %v3609_v9  ;;  %2512 = vmatpush3.bf16.msra.mxu1 %v2511_v19  ;;  %v3671_v19 = vpack.c.bf16 %v369_v11, %v363_v6  ;;  %4298 = vst [vmem:[#allocation17_spill] sm:$0xff] %v3674_v22  ;;  %v359_v28 = vld [vmem:[#allocation8 + $0x228] sm:$0xff]  ;;  %v352_v37 = vld [vmem:[#allocation8 + $0x1f0] sm:$0xff]  ;;  %v358_v38 = vld [vmem:[#allocation8 + $0x220] sm:$0xff]  ;;  %v3755_v11 = vshrl.u32 %v134_v10, 7 }
  0x6f   :  { %2513 = vmatprep.subr.bf16.mxu1 %v4269_v0  ;;  %4299 = vst [vmem:[#allocation18_spill] sm:$0xff] %v3680_v32  ;;  %v3686_v36 = vpack.c.bf16 %v359_v28, %v353_v26  ;;  %v365_v40 = vld [vmem:[#allocation8 + $0x258] sm:$0xff]  ;;  %v371_v41 = vld [vmem:[#allocation8 + $0x288] sm:$0xff]  ;;  %v3692_v46 = vpack.c.bf16 %v358_v38, %v352_v37  ;;  %v364_v48 = vld [vmem:[#allocation8 + $0x250] sm:$0xff] }
  0x70   :  { %214 = vmatmul.mubr.f32.vlgmr.msra.gmra.mrb[0].mxu0 %v83_v15  ;;  %v3696_v47 = vpack.c.bf16 %v371_v41, %v365_v40  ;;  %v370_v49 = vld [vmem:[#allocation8 + $0x280] sm:$0xff]  ;;  %v377_v50 = vld [vmem:[#allocation8 + $0x2b8] sm:$0xff]  ;;  %v383_v52 = vld [vmem:[#allocation8 + $0x2e8] sm:$0xff]  ;;  %v136_v12 = vsub.s32 0, %v3755_v11 }
  0x71   :  { %2519 = vmatpush1.bf16.msra.mxu0 %v3612_v16  ;;  %473 = vmatprep.mubr.f32.mxu0 %v4271_v1  ;;  %4300 = vst [vmem:[#allocation19_spill] sm:$0xff] %v3686_v36  ;;  %4301 = vst [vmem:[#allocation20_spill] sm:$0xff] %v3692_v46  ;;  %v3702_v53 = vld [vmem:[%s4261_s1] sm:$0x1]  ;;  %v3705_v56 = vpack.c.bf16 %v370_v49, %v364_v48  ;;  %v3708_v58 = vpack.c.bf16 %v383_v52, %v377_v50  ;;  %v376_v59 = vld [vmem:[#allocation8 + $0x2b0] sm:$0xff] }
  0x72   :  { %2521 = vmatprep.subr.bf16.mxu0 %v3615_v20  ;;  %2515 = vmatpush3.bf16.msra.mxu1 %v2514_v30  ;;  %v374_v30 = vld [vmem:[#allocation8 + $0x2a0] sm:$0xff]  ;;  %4302 = vst [vmem:[#allocation21_spill] sm:$0xff] %v3696_v47  ;;  %v295_v62 = vld [vmem:[#allocation8 + $0x28] sm:$0xff]  ;;  %v301_v2 = vld [vmem:[#allocation8 + $0x58] sm:$0xff] }
  0x73   :  { %2549 = vmatprep.subr.bf16.mxu1 %v3625_v33  ;;  %v3689_v44 = vpack.c.bf16 %v380_v35, %v374_v30  ;;  %4303 = vst [vmem:[#allocation22_spill] sm:$0xff] %v3705_v56  ;;  %4304 = vst [vmem:[#allocation23_spill] sm:$0xff] %v3708_v58  ;;  %v382_v60 = vld [vmem:[#allocation8 + $0x2e0] sm:$0xff]  ;;  %v3752_v3 = vpack.c.bf16 %v301_v2, %v295_v62 }
  0x74   :  { %v3713_v61 = vpack.c.bf16 %v382_v60, %v376_v59  ;;  %v3761_v13 = vld [vmem:[%s4265_s5] sm:$0x3f]  ;;  %v144_v59 = vsub.s32 2, %v3755_v11 }
  0x75   :  { %2523 = vmatpush1.bf16.msra.mxu0 %v3619_v27  ;;  %2423 = vmatmul.mubr.f32.vlgmr.msra.gmra.mrb[0].mxu1 %v83_v15  ;;  %v362_v15 = vld [vmem:[#allocation8 + $0x240] sm:$0xff]  ;;  %v3768_v23 = vrot.slane %v3761_v13, %v136_v12 }
  0x76   :  { %2525 = vmatprep.subr.bf16.mxu0 %v3622_v31  ;;  %2551 = vmatpush1.bf16.msra.mxu1 %v3631_v42  ;;  %v3677_v29 = vpack.c.bf16 %v368_v17, %v362_v15  ;;  %4305 = vst [vmem:[#allocation24_spill] sm:$0xff] %v3713_v61  ;;  %v132_v15 = vld [vmem:[%s4263_s3] sm:$0x7]  ;;  %v140_v17 = vsub.s32 1, %v3755_v11  ;;  %v3777_v60 = vrot.slane %v3761_v13, %v144_v59 }
  0x77   :  { %2553 = vmatprep.subr.bf16.mxu1 %v3637_v45  ;;  %544 = vmatprep.mubr.f32.mxu1 %v4271_v1  ;;  %v137_v21 = vrot.slane %v132_v15, %v136_v12  ;;  %4306 = vst [vmem:[#allocation25_spill] sm:$0xff] %v3768_v23  ;;  %v145_v2 = vrot.slane %v132_v15, %v144_v59  ;;  %v319_v59 = vld [vmem:[#allocation8 + $0xe8] sm:$0xff] }
  0x78   :  { %v141_v24 = vrot.slane %v132_v15, %v140_v17  ;;  %v3771_v25 = vrot.slane %v3761_v13, %v140_v17  ;;  %4307 = vst [vmem:[#allocation26_spill] sm:$0xff] %v3777_v60 }
  0x79   :  { %2527 = vmatpush1.bf16.msra.mxu0 %v3629_v39  ;;  %v3276_v26 = vadd.f32 %v3768_v23, %v137_v21 }
  0x7a   :  { %2529 = vmatprep.subr.bf16.mxu0 %v3634_v43  ;;  %2555 = vmatpush1.bf16.msra.mxu1 %v3643_v54  ;;  %v3278_v30 = vadd.f32 %v3771_v25, %v141_v24 }
  0x7b   :  { %2557 = vmatprep.subr.bf16.mxu1 %v3649_v57 }
  0x7d   :  { %2531 = vmatpush1.bf16.msra.mxu0 %v3640_v51 }
  0x7e   :  { %2533 = vmatprep.subr.bf16.mxu0 %v3646_v55  ;;  %2559 = vmatpush1.bf16.msra.mxu1 %v3656_v4 }
  0x7f   :  { %2561 = vmatprep.subr.bf16.mxu1 %v3662_v7 }
  0x81   :  { %2535 = vmatpush1.bf16.msra.mxu0 %v3653_v63 }
  0x82   :  { %2537 = vmatprep.subr.bf16.mxu0 %v3659_v5  ;;  %2563 = vmatpush1.bf16.msra.mxu1 %v3668_v18 }
  0x83   :  { %2565 = vmatprep.subr.bf16.mxu1 %v3674_v22 }
  0x85   :  { %2539 = vmatpush1.bf16.msra.mxu0 %v3665_v14 }
  0x86   :  { %2541 = vmatprep.subr.bf16.mxu0 %v3671_v19  ;;  %2567 = vmatpush1.bf16.msra.mxu1 %v3680_v32 }
  0x87   :  { %2569 = vmatprep.subr.bf16.mxu1 %v3686_v36 }
  0x89   :  { %2543 = vmatpush1.bf16.msra.mxu0 %v3677_v29 }
  0x8a   :  { %2545 = vmatprep.subr.bf16.mxu0 %v3683_v34  ;;  %2571 = vmatpush1.bf16.msra.mxu1 %v3692_v46 }
  0x8b   :  { %2573 = vmatprep.subr.bf16.mxu1 %v3696_v47 }
  0x8d   :  { %2547 = vmatpush1.bf16.msra.mxu0 %v3689_v44 }
  0x8e   :  { %2581 = vmatprep.subr.bf16.mxu0 %v3609_v9  ;;  %2575 = vmatpush1.bf16.msra.mxu1 %v3705_v56 }
  0x8f   :  { %2577 = vmatprep.subr.bf16.mxu1 %v3708_v58 }
  0x90   :  { %474 = vmatmul.mubr.f32.vlgmr.msra.gmra.mrb[0].mxu0 %v3702_v53 }
  0x91   :  { %2583 = vmatpush1.bf16.msra.mxu0 %v3612_v16  ;;  %646 = vmatprep.mubr.f32.mxu0 %v4271_v1 }
  0x92   :  { %2585 = vmatprep.subr.bf16.mxu0 %v3615_v20  ;;  %2579 = vmatpush1.bf16.msra.mxu1 %v3713_v61 }
  0x93   :  { %2613 = vmatprep.subr.bf16.mxu1 %v3625_v33 }
  0x95   :  { %2587 = vmatpush1.bf16.msra.mxu0 %v3619_v27  ;;  %545 = vmatmul.mubr.f32.vlgmr.msra.gmra.mrb[2].mxu1 %v3702_v53 }
  0x96   :  { %2589 = vmatprep.subr.bf16.mxu0 %v3622_v31  ;;  %2615 = vmatpush1.bf16.msra.mxu1 %v3631_v42 }
  0x97   :  { %2617 = vmatprep.subr.bf16.mxu1 %v3637_v45  ;;  %717 = vmatprep.mubr.f32.mxu1 %v4271_v1 }
  0x99   :  { %2591 = vmatpush1.bf16.msra.mxu0 %v3629_v39 }
  0x9a   :  { %2593 = vmatprep.subr.bf16.mxu0 %v3634_v43  ;;  %2619 = vmatpush1.bf16.msra.mxu1 %v3643_v54 }
  0x9b   :  { %2621 = vmatprep.subr.bf16.mxu1 %v3649_v57 }
  0x9d   :  { %2595 = vmatpush1.bf16.msra.mxu0 %v3640_v51 }
  0x9e   :  { %2597 = vmatprep.subr.bf16.mxu0 %v3646_v55  ;;  %2623 = vmatpush1.bf16.msra.mxu1 %v3656_v4 }
  0x9f   :  { %2625 = vmatprep.subr.bf16.mxu1 %v3662_v7 }
  0xa1   :  { %2599 = vmatpush1.bf16.msra.mxu0 %v3653_v63 }
  0xa2   :  { %2601 = vmatprep.subr.bf16.mxu0 %v3659_v5  ;;  %2627 = vmatpush1.bf16.msra.mxu1 %v3668_v18 }
  0xa3   :  { %2629 = vmatprep.subr.bf16.mxu1 %v3674_v22 }
  0xa5   :  { %2603 = vmatpush1.bf16.msra.mxu0 %v3665_v14 }
  0xa6   :  { %2605 = vmatprep.subr.bf16.mxu0 %v3671_v19  ;;  %2631 = vmatpush1.bf16.msra.mxu1 %v3680_v32 }
  0xa7   :  { %2633 = vmatprep.subr.bf16.mxu1 %v3686_v36 }
  0xa9   :  { %2607 = vmatpush1.bf16.msra.mxu0 %v3677_v29 }
  0xaa   :  { %2609 = vmatprep.subr.bf16.mxu0 %v3683_v34  ;;  %2635 = vmatpush1.bf16.msra.mxu1 %v3692_v46 }
  0xab   :  { %2637 = vmatprep.subr.bf16.mxu1 %v3696_v47 }
  0xad   :  { %2611 = vmatpush1.bf16.msra.mxu0 %v3689_v44 }
  0xae   :  { %2639 = vmatpush1.bf16.msra.mxu1 %v3705_v56  ;;  %2645 = vmatprep.subr.bf16.mxu0 %v3752_v3 }
  0xaf   :  { %2641 = vmatprep.subr.bf16.mxu1 %v3708_v58 }
  0xb2   :  { %2643 = vmatpush1.bf16.msra.mxu1 %v3713_v61 }
  0xb3   :  { %2677 = vmatprep.subr.bf16.mxu1 %v3609_v9 }
 0x148   :  { %v286_v6 = vpop.f32.mrb[0].mxu1 }
 0x149   :  { %v2424_v8 = vpop.f32.mrb[1].mxu1  ;;  %v287_v17 = vadd.f32 %v286_v6, %v145_v2  ;;  %v306_v6 = vld [vmem:[#allocation8 + $0x80] sm:$0xff] }
 0x163   :  { %v475_v28 = vpop.f32.mrb[0].mxu0 }
 0x164   :  { %v3277_v35 = vadd.f32 %v3276_v26, %v475_v28  ;;  %v477_v37 = vpop.f32.mrb[1].mxu0 }
 0x165   :  { %v3279_v40 = vadd.f32 %v3278_v30, %v477_v37  ;;  %v294_v30 = vld [vmem:[#allocation8 + $0x20] sm:$0xff] }
 0x166   :  { %v2339_v38 = vmul.f32 -1.442695, %v3277_v35  ;;  %v300_v35 = vld [vmem:[#allocation8 + $0x50] sm:$0xff] }
 0x167   :  { %v2340_v41 = vmul.f32 -1.442695, %v3279_v40  ;;  %v313_v40 = vld [vmem:[#allocation8 + $0xb8] sm:$0xff]  ;;  %v3781_v15 = vpack.c.bf16 %v300_v35, %v294_v30  ;;  %v343_v30 = vld [vmem:[#allocation8 + $0x1a8] sm:$0xff] }
 0x168   :  { %3296 = vpow2.f32 %v2339_v38  ;;  %v546_v48 = vpop.f32.mrb[2].mxu1  ;;  %v307_v38 = vld [vmem:[#allocation8 + $0x88] sm:$0xff]  ;;  %v349_v35 = vld [vmem:[#allocation8 + $0x1d8] sm:$0xff] }
 0x169   :  { %v548_v49 = vpop.f32.mrb[3].mxu1  ;;  %3298 = vpow2.f32 %v2340_v41  ;;  %v547_v10 = vadd.f32 %v546_v48, %v3777_v60  ;;  %v3785_v48 = vpack.c.bf16 %v313_v40, %v307_v38  ;;  %v3812_v38 = vpack.c.bf16 %v349_v35, %v343_v30  ;;  %v342_v40 = vld [vmem:[#allocation8 + $0x1a0] sm:$0xff]  ;;  %v372_v30 = vld [vmem:[#allocation8 + $0x290] sm:$0xff]  ;;  %v379_v35 = vld [vmem:[#allocation8 + $0x2c8] sm:$0xff] }
 0x172   :  { %v3297_v50 = vpop.eup %3296 }
 0x173   :  { %v554_v52 = vadd.f32 1.0, %v3297_v50  ;;  %v3299_v62 = vpop.eup %3298 }
 0x174   :  { %v561_v8 = vadd.f32 1.0, %v3299_v62  ;;  %v325_v62 = vld [vmem:[#allocation8 + $0x118] sm:$0xff] }
 0x175   :  { %3300 = vrcp.f32 %v554_v52  ;;  %v312_v52 = vld [vmem:[#allocation8 + $0xb0] sm:$0xff] }
 0x176   :  { %3302 = vrcp.f32 %v561_v8  ;;  %v3791_v2 = vpack.c.bf16 %v312_v52, %v306_v6  ;;  %v318_v8 = vld [vmem:[#allocation8 + $0xe0] sm:$0xff]  ;;  %v361_v6 = vld [vmem:[#allocation8 + $0x238] sm:$0xff] }
 0x17f   :  { %v3301_v12 = vpop.eup %3300 }
 0x180   :  { %v564_v21 = vmul.f32 %v3301_v12, %v547_v10  ;;  %v3303_v26 = vpop.eup %3302  ;;  %v324_v10 = vld [vmem:[#allocation8 + $0x110] sm:$0xff]  ;;  %v331_v12 = vld [vmem:[#allocation8 + $0x148] sm:$0xff] }
 0x181   :  { %v567_v28 = vsub.f32 1.0, %v3303_v26  ;;  %v569_v49 = vmul.f32 %v3303_v26, %v3702_v53  ;;  %v3795_v53 = vpack.c.bf16 %v325_v62, %v319_v59  ;;  %v330_v26 = vld [vmem:[#allocation8 + $0x140] sm:$0xff] }
 0x182   :  { %v565_v24 = vadd.f32 %v564_v21, %v287_v17  ;;  %v337_v17 = vld [vmem:[#allocation8 + $0x178] sm:$0xff]  ;;  %v3801_v21 = vpack.c.bf16 %v324_v10, %v318_v8  ;;  %v354_v62 = vld [vmem:[#allocation8 + $0x200] sm:$0xff]  ;;  %v360_v8 = vld [vmem:[#allocation8 + $0x230] sm:$0xff] }
 0x183   :  { %v367_v10 = vld [vmem:[#allocation8 + $0x268] sm:$0xff] }
 0x184   :  { %3304 = vtanh.f32 %v565_v24  ;;  %v3804_v24 = vpack.c.bf16 %v337_v17, %v331_v12  ;;  %v373_v12 = vld [vmem:[#allocation8 + $0x298] sm:$0xff]  ;;  %v3825_v17 = vpack.c.bf16 %v360_v8, %v354_v62  ;;  %v384_v62 = vld [vmem:[#allocation8 + $0x2f0] sm:$0xff] }
 0x18e   :  { %v3305_v37 = vpop.eup %3304 }
 0x18f   :  { %v568_v41 = vmul.f32 %v3305_v37, %v567_v28  ;;  %v336_v28 = vld [vmem:[#allocation8 + $0x170] sm:$0xff] }
 0x190   :  { %v3809_v37 = vpack.c.bf16 %v336_v28, %v330_v26  ;;  %v3828_v26 = vpack.c.bf16 %v373_v12, %v367_v10  ;;  %v366_v28 = vld [vmem:[#allocation8 + $0x260] sm:$0xff]  ;;  %v403_v10 = vsub.s32 3, %v3755_v11 }
 0x191   :  { %v3783_v50 = vadd.f32 %v569_v49, %v568_v41  ;;  %v348_v41 = vld [vmem:[#allocation8 + $0x1d0] sm:$0xff]  ;;  %v355_v49 = vld [vmem:[#allocation8 + $0x208] sm:$0xff] }
 0x192   :  { %v3817_v52 = vpack.c.bf16 %v348_v41, %v342_v40  ;;  %v3820_v59 = vpack.c.bf16 %v361_v6, %v355_v49  ;;  %v385_v40 = vld [vmem:[#allocation8 + $0x2f8] sm:$0xff]  ;;  %v3833_v41 = vpack.c.bf16 %v372_v30, %v366_v28  ;;  %v378_v6 = vld [vmem:[#allocation8 + $0x2c0] sm:$0xff]  ;;  %v3870_v12 = vrot.slane %v3761_v13, %v403_v10 }
 0x193   :  { %571 = vst [vmem:[#allocation2 + $0x7] sm:$0x1] %v3783_v50  ;;  %647 = vmatmul.mubr.f32.vlgmr.msra.gmra.mrb[2].mxu0 %v3783_v50  ;;  %718 = vmatmul.mubr.f32.vlgmr.msra.gmra.mrb[4].mxu1 %v3783_v50  ;;  %v3836_v49 = vpack.c.bf16 %v385_v40, %v379_v35  ;;  %v3841_v8 = vpack.c.bf16 %v384_v62, %v378_v6 }
 0x194   :  { %2647 = vmatpush1.bf16.msra.mxu0 %v3781_v15  ;;  %788 = vmatprep.mubr.f32.mxu0 %v4271_v1  ;;  %4308 = vst [vmem:[#allocation27_spill] sm:$0xff] %v3870_v12 }
 0x195   :  { %2649 = vmatprep.subr.bf16.mxu0 %v3785_v48  ;;  %2679 = vmatpush1.bf16.msra.mxu1 %v3612_v16 }
 0x196   :  { %2681 = vmatprep.subr.bf16.mxu1 %v3615_v20  ;;  %881 = vmatprep.mubr.f32.mxu1 %v4271_v1 }
 0x198   :  { %2651 = vmatpush1.bf16.msra.mxu0 %v3791_v2 }
 0x199   :  { %2653 = vmatprep.subr.bf16.mxu0 %v3795_v53  ;;  %2683 = vmatpush1.bf16.msra.mxu1 %v3619_v27 }
 0x19a   :  { %2685 = vmatprep.subr.bf16.mxu1 %v3622_v31 }
 0x19c   :  { %2655 = vmatpush1.bf16.msra.mxu0 %v3801_v21 }
 0x19d   :  { %2657 = vmatprep.subr.bf16.mxu0 %v3804_v24  ;;  %2687 = vmatpush1.bf16.msra.mxu1 %v3629_v39 }
 0x19e   :  { %2689 = vmatprep.subr.bf16.mxu1 %v3634_v43 }
 0x1a0   :  { %2659 = vmatpush1.bf16.msra.mxu0 %v3809_v37 }
 0x1a1   :  { %2661 = vmatprep.subr.bf16.mxu0 %v3812_v38  ;;  %2691 = vmatpush1.bf16.msra.mxu1 %v3640_v51 }
 0x1a2   :  { %2693 = vmatprep.subr.bf16.mxu1 %v3646_v55 }
 0x1a4   :  { %2663 = vmatpush1.bf16.msra.mxu0 %v3817_v52 }
 0x1a5   :  { %2665 = vmatprep.subr.bf16.mxu0 %v3820_v59  ;;  %2695 = vmatpush1.bf16.msra.mxu1 %v3653_v63 }
 0x1a6   :  { %2697 = vmatprep.subr.bf16.mxu1 %v3659_v5 }
 0x1a8   :  { %2667 = vmatpush1.bf16.msra.mxu0 %v3825_v17 }
 0x1a9   :  { %2669 = vmatprep.subr.bf16.mxu0 %v3828_v26  ;;  %2699 = vmatpush1.bf16.msra.mxu1 %v3665_v14 }
 0x1aa   :  { %2701 = vmatprep.subr.bf16.mxu1 %v3671_v19 }
 0x1ac   :  { %2671 = vmatpush1.bf16.msra.mxu0 %v3833_v41 }
 0x1ad   :  { %2673 = vmatprep.subr.bf16.mxu0 %v3836_v49  ;;  %2703 = vmatpush1.bf16.msra.mxu1 %v3677_v29 }
 0x1ae   :  { %2705 = vmatprep.subr.bf16.mxu1 %v3683_v34 }
 0x1b0   :  { %2675 = vmatpush1.bf16.msra.mxu0 %v3841_v8 }
 0x1b1   :  { %2709 = vmatprep.subr.bf16.mxu0 %v3625_v33  ;;  %2707 = vmatpush1.bf16.msra.mxu1 %v3689_v44 }
 0x1b2   :  { %2741 = vmatprep.subr.bf16.mxu1 %v3752_v3 }
 0x1b3   :  { %789 = vmatmul.mubr.f32.vlgmr.msra.gmra.mrb[4].mxu0 %v3783_v50 }
 0x1b4   :  { %2711 = vmatpush1.bf16.msra.mxu0 %v3631_v42  ;;  %952 = vmatprep.mubr.f32.mxu0 %v4271_v1 }
 0x1b5   :  { %2713 = vmatprep.subr.bf16.mxu0 %v3637_v45 }
 0x1b8   :  { %2715 = vmatpush1.bf16.msra.mxu0 %v3643_v54 }
 0x1b9   :  { %2717 = vmatprep.subr.bf16.mxu0 %v3649_v57 }
 0x1bc   :  { %2719 = vmatpush1.bf16.msra.mxu0 %v3656_v4 }
 0x1bd   :  { %2721 = vmatprep.subr.bf16.mxu0 %v3662_v7 }
 0x1c0   :  { %2723 = vmatpush1.bf16.msra.mxu0 %v3668_v18 }
 0x1c1   :  { %2725 = vmatprep.subr.bf16.mxu0 %v3674_v22 }
 0x1c4   :  { %2727 = vmatpush1.bf16.msra.mxu0 %v3680_v32 }
 0x1c5   :  { %2729 = vmatprep.subr.bf16.mxu0 %v3686_v36 }
 0x1c8   :  { %2731 = vmatpush1.bf16.msra.mxu0 %v3692_v46 }
 0x1c9   :  { %2733 = vmatprep.subr.bf16.mxu0 %v3696_v47 }
 0x1cc   :  { %2735 = vmatpush1.bf16.msra.mxu0 %v3705_v56  ;;  %v578_v56 = vsub.s32 5, %v3755_v11 }
 0x1cd   :  { %2737 = vmatprep.subr.bf16.mxu0 %v3708_v58 }
 0x1ce   :  { %v3880_v47 = vrot.slane %v3761_v13, %v578_v56 }
 0x1d0   :  { %2739 = vmatpush1.bf16.msra.mxu0 %v3713_v61 }
 0x1d1   :  { %2773 = vmatprep.subr.bf16.mxu0 %v3609_v9  ;;  %v574_v9 = vsub.s32 4, %v3755_v11 }
 0x1d3   :  { %v3877_v10 = vrot.slane %v3761_v13, %v574_v9 }
 0x266   :  { %v648_v28 = vpop.f32.mrb[2].mxu0  ;;  %v719_v30 = vpop.f32.mrb[4].mxu1 }
 0x267   :  { %v649_v35 = vadd.f32 %v648_v28, %v3768_v23  ;;  %v650_v40 = vpop.f32.mrb[3].mxu0  ;;  %v721_v6 = vpop.f32.mrb[5].mxu1  ;;  %v720_v28 = vadd.f32 %v719_v30, %v3777_v60 }
 0x268   :  { %v722_v62 = vadd.f32 %v721_v6, %v3870_v12 }
 0x26a   :  { %v795_v0 = vadd.f32 %v722_v62, %v649_v35 }
 0x26c   :  { %v2341_v1 = vmul.f32 -1.442695, %v795_v0  ;;  %v651_v0 = vadd.f32 %v650_v40, %v3771_v25 }
 0x26e   :  { %3306 = vpow2.f32 %v2341_v1 }
 0x278   :  { %v3307_v58 = vpop.eup %3306 }
 0x279   :  { %v799_v61 = vadd.f32 1.0, %v3307_v58 }
 0x27b   :  { %3308 = vrcp.f32 %v799_v61 }
 0x285   :  { %v3309_v23 = vpop.eup %3308 }
 0x286   :  { %v790_v6 = vpop.f32.mrb[4].mxu0  ;;  %v809_v35 = vmul.f32 %v3309_v23, %v720_v28  ;;  %v4313_v28 = vld [vmem:[#allocation23_spill] sm:$0xff] }
 0x287   :  { %v791_v1 = vadd.f32 %v790_v6, %v3877_v10  ;;  %v792_v58 = vpop.f32.mrb[5].mxu0  ;;  %v4314_v6 = vld [vmem:[#allocation24_spill] sm:$0xff] }
 0x288   :  { %v793_v61 = vadd.f32 %v792_v58, %v3880_v47  ;;  %v4316_v58 = vld [vmem:[#allocation25_spill] sm:$0xff] }
 0x289   :  { %v802_v62 = vadd.f32 %v791_v1, %v651_v0 }
 0x28a   :  { %v810_v11 = vadd.f32 %v809_v35, %v793_v61  ;;  %v4315_v35 = vld [vmem:[#allocation16_spill] sm:$0xff] }
 0x28b   :  { %v2342_v12 = vmul.f32 -1.442695, %v802_v62 }
 0x28d   :  { %3310 = vpow2.f32 %v2342_v12  ;;  %v4309_v12 = vmov 0.0  }
 0x297   :  { %v3311_v9 = vpop.eup %3310 }
 0x298   :  { %v806_v46 = vadd.f32 1.0, %v3311_v9  ;;  %v4317_v9 = vld [vmem:[#allocation27_spill] sm:$0xff] }
 0x29a   :  { %3312 = vrcp.f32 %v806_v46  ;;  %v4310_v46 = vld [vmem:[#allocation20_spill] sm:$0xff] }
 0x29b   :  { %3314 = vtanh.f32 %v810_v11 }
 0x2a4   :  { %v3313_v56 = vpop.eup %3312 }
 0x2a5   :  { %v812_v13 = vsub.f32 1.0, %v3313_v56  ;;  %v3315_v30 = vpop.eup %3314  ;;  %v814_v23 = vmul.f32 %v3313_v56, %v3783_v50  ;;  %v4312_v50 = vld [vmem:[#allocation22_spill] sm:$0xff] }
 0x2a7   :  { %v813_v60 = vmul.f32 %v3315_v30, %v812_v13 }
 0x2a9   :  { %v3887_v40 = vadd.f32 %v814_v23, %v813_v60  ;;  %v4311_v60 = vld [vmem:[#allocation21_spill] sm:$0xff] }
 0x2ab   :  { %816 = vst [vmem:[#allocation2 + $0x6] sm:$0x1] %v3887_v40  ;;  %882 = vmatmul.mubr.f32.vlgmr.msra.gmra.mrb[6].mxu1 %v3887_v40  ;;  %953 = vmatmul.mubr.f32.vlgmr.msra.gmra.mrb[6].mxu0 %v3887_v40 }
 0x2ac   :  { %2743 = vmatpush1.bf16.msra.mxu1 %v3781_v15  ;;  %1023 = vmatprep.mubr.f32.mxu1 %v4309_v12 }
 0x2ad   :  { %2745 = vmatprep.subr.bf16.mxu1 %v3785_v48  ;;  %2775 = vmatpush1.bf16.msra.mxu0 %v3612_v16 }
 0x2ae   :  { %2777 = vmatprep.subr.bf16.mxu0 %v3615_v20  ;;  %1116 = vmatprep.mubr.f32.mxu0 %v4309_v12 }
 0x2b0   :  { %2747 = vmatpush1.bf16.msra.mxu1 %v3791_v2 }
 0x2b1   :  { %2749 = vmatprep.subr.bf16.mxu1 %v3795_v53  ;;  %2779 = vmatpush1.bf16.msra.mxu0 %v3619_v27 }
 0x2b2   :  { %2781 = vmatprep.subr.bf16.mxu0 %v3622_v31 }
 0x2b4   :  { %2751 = vmatpush1.bf16.msra.mxu1 %v3801_v21 }
 0x2b5   :  { %2753 = vmatprep.subr.bf16.mxu1 %v3804_v24  ;;  %2783 = vmatpush1.bf16.msra.mxu0 %v3629_v39 }
 0x2b6   :  { %2785 = vmatprep.subr.bf16.mxu0 %v3634_v43 }
 0x2b8   :  { %2755 = vmatpush1.bf16.msra.mxu1 %v3809_v37 }
 0x2b9   :  { %2757 = vmatprep.subr.bf16.mxu1 %v3812_v38  ;;  %2787 = vmatpush1.bf16.msra.mxu0 %v3640_v51 }
 0x2ba   :  { %2789 = vmatprep.subr.bf16.mxu0 %v3646_v55 }
 0x2bc   :  { %2759 = vmatpush1.bf16.msra.mxu1 %v3817_v52 }
 0x2bd   :  { %2761 = vmatprep.subr.bf16.mxu1 %v3820_v59  ;;  %2791 = vmatpush1.bf16.msra.mxu0 %v3653_v63 }
 0x2be   :  { %2793 = vmatprep.subr.bf16.mxu0 %v3659_v5 }
 0x2c0   :  { %2763 = vmatpush1.bf16.msra.mxu1 %v3825_v17 }
 0x2c1   :  { %2765 = vmatprep.subr.bf16.mxu1 %v3828_v26  ;;  %2795 = vmatpush1.bf16.msra.mxu0 %v3665_v14 }
 0x2c2   :  { %2797 = vmatprep.subr.bf16.mxu0 %v3671_v19 }
 0x2c4   :  { %2767 = vmatpush1.bf16.msra.mxu1 %v3833_v41 }
 0x2c5   :  { %2769 = vmatprep.subr.bf16.mxu1 %v3836_v49  ;;  %2799 = vmatpush1.bf16.msra.mxu0 %v3677_v29 }
 0x2c6   :  { %2801 = vmatprep.subr.bf16.mxu0 %v3683_v34 }
 0x2c8   :  { %2771 = vmatpush1.bf16.msra.mxu1 %v3841_v8 }
 0x2c9   :  { %2805 = vmatprep.subr.bf16.mxu1 %v3625_v33  ;;  %2803 = vmatpush1.bf16.msra.mxu0 %v3689_v44 }
 0x2ca   :  { %2837 = vmatprep.subr.bf16.mxu0 %v3752_v3 }
 0x2cb   :  { %1024 = vmatmul.mubr.f32.vlgmr.msra.gmra.mrb[8].mxu1 %v3887_v40 }
 0x2cc   :  { %2807 = vmatpush1.bf16.msra.mxu1 %v3631_v42  ;;  %1187 = vmatprep.mubr.f32.mxu1 %v4309_v12 }
 0x2cd   :  { %2809 = vmatprep.subr.bf16.mxu1 %v3637_v45 }
 0x2d0   :  { %2811 = vmatpush1.bf16.msra.mxu1 %v3643_v54 }
 0x2d1   :  { %2813 = vmatprep.subr.bf16.mxu1 %v3649_v57 }
 0x2d4   :  { %2815 = vmatpush1.bf16.msra.mxu1 %v3656_v4 }
 0x2d5   :  { %2817 = vmatprep.subr.bf16.mxu1 %v3662_v7 }
 0x2d8   :  { %2819 = vmatpush1.bf16.msra.mxu1 %v3668_v18 }
 0x2d9   :  { %2821 = vmatprep.subr.bf16.mxu1 %v3674_v22 }
 0x2dc   :  { %2823 = vmatpush1.bf16.msra.mxu1 %v3680_v32 }
 0x2dd   :  { %2825 = vmatprep.subr.bf16.mxu1 %v3686_v36 }
 0x2e0   :  { %2827 = vmatpush1.bf16.msra.mxu1 %v4310_v46 }
 0x2e1   :  { %2829 = vmatprep.subr.bf16.mxu1 %v4311_v60 }
 0x2e4   :  { %2831 = vmatpush1.bf16.msra.mxu1 %v4312_v50  ;;  %v4318_v50 = vld [vmem:[#allocation26_spill] sm:$0xff] }
 0x2e5   :  { %2833 = vmatprep.subr.bf16.mxu1 %v4313_v28 }
 0x2e8   :  { %2835 = vmatpush1.bf16.msra.mxu1 %v4314_v6 }
 0x2e9   :  { %2869 = vmatprep.subr.bf16.mxu1 %v4315_v35 }
 0x37e   :  { %v883_v0 = vpop.f32.mrb[6].mxu1  ;;  %v954_v1 = vpop.f32.mrb[6].mxu0 }
 0x37f   :  { %v884_v61 = vadd.f32 %v883_v0, %v4316_v58  ;;  %v885_v62 = vpop.f32.mrb[7].mxu1  ;;  %v956_v11 = vpop.f32.mrb[7].mxu0  ;;  %v955_v28 = vadd.f32 %v954_v1, %v4318_v50 }
 0x380   :  { %v957_v56 = vadd.f32 %v956_v11, %v4317_v9  ;;  %v886_v35 = vadd.f32 %v885_v62, %v3771_v25  ;;  %v4326_v62 = vld [vmem:[#allocation24_spill] sm:$0xff] }
 0x382   :  { %v1030_v13 = vadd.f32 %v957_v56, %v884_v61 }
 0x384   :  { %v2343_v30 = vmul.f32 -1.442695, %v1030_v13 }
 0x386   :  { %3316 = vpow2.f32 %v2343_v30 }
 0x390   :  { %v3317_v23 = vpop.eup %3316 }
 0x391   :  { %v1034_v60 = vadd.f32 1.0, %v3317_v23 }
 0x393   :  { %3318 = vrcp.f32 %v1034_v60 }
 0x39d   :  { %v3319_v46 = vpop.eup %3318 }
 0x39e   :  { %v1025_v6 = vpop.f32.mrb[8].mxu1  ;;  %v1044_v36 = vmul.f32 %v3319_v46, %v955_v28 }
 0x39f   :  { %v1026_v32 = vadd.f32 %v1025_v6, %v3877_v10  ;;  %v1027_v0 = vpop.f32.mrb[9].mxu1  ;;  %v4323_v6 = vld [vmem:[#allocation21_spill] sm:$0xff] }
 0x3a0   :  { %v1028_v58 = vadd.f32 %v1027_v0, %v3880_v47  ;;  %v4327_v0 = vld [vmem:[#allocation16_spill] sm:$0xff] }
 0x3a1   :  { %v1037_v22 = vadd.f32 %v1026_v32, %v886_v35  ;;  %v4320_v32 = vld [vmem:[#allocation18_spill] sm:$0xff] }
 0x3a2   :  { %v1045_v11 = vadd.f32 %v1044_v36, %v1028_v58  ;;  %v4321_v36 = vld [vmem:[#allocation19_spill] sm:$0xff]  ;;  %v4324_v35 = vld [vmem:[#allocation22_spill] sm:$0xff] }
 0x3a3   :  { %v2344_v61 = vmul.f32 -1.442695, %v1037_v22  ;;  %v4319_v22 = vld [vmem:[#allocation17_spill] sm:$0xff]  ;;  %v4325_v58 = vld [vmem:[#allocation23_spill] sm:$0xff] }
 0x3a5   :  { %3320 = vpow2.f32 %v2344_v61 }
 0x3af   :  { %v3321_v56 = vpop.eup %3320 }
 0x3b0   :  { %v1041_v13 = vadd.f32 1.0, %v3321_v56  ;;  %v4328_v56 = vld [vmem:[#allocation25_spill] sm:$0xff] }
 0x3b2   :  { %3322 = vrcp.f32 %v1041_v13 }
 0x3b3   :  { %3324 = vtanh.f32 %v1045_v11 }
 0x3bc   :  { %v3323_v60 = vpop.eup %3322 }
 0x3bd   :  { %v1047_v1 = vsub.f32 1.0, %v3323_v60  ;;  %v3325_v30 = vpop.eup %3324  ;;  %v1049_v46 = vmul.f32 %v3323_v60, %v3887_v40  ;;  %v4322_v40 = vld [vmem:[#allocation20_spill] sm:$0xff] }
 0x3bf   :  { %v1048_v23 = vmul.f32 %v3325_v30, %v1047_v1 }
 0x3c1   :  { %v3951_v28 = vadd.f32 %v1049_v46, %v1048_v23 }
 0x3c3   :  { %1051 = vst [vmem:[#allocation2 + $0x5] sm:$0x1] %v3951_v28  ;;  %1117 = vmatmul.mubr.f32.vlgmr.msra.gmra.mrb[8].mxu0 %v3951_v28  ;;  %1188 = vmatmul.mubr.f32.vlgmr.msra.gmra.mrb[10].mxu1 %v3951_v28 }
 0x3c4   :  { %2839 = vmatpush1.bf16.msra.mxu0 %v3781_v15  ;;  %1258 = vmatprep.mubr.f32.mxu0 %v4309_v12 }
 0x3c5   :  { %2841 = vmatprep.subr.bf16.mxu0 %v3785_v48  ;;  %2871 = vmatpush1.bf16.msra.mxu1 %v3612_v16 }
 0x3c6   :  { %2873 = vmatprep.subr.bf16.mxu1 %v3615_v20  ;;  %1351 = vmatprep.mubr.f32.mxu1 %v4309_v12 }
 0x3c8   :  { %2843 = vmatpush1.bf16.msra.mxu0 %v3791_v2 }
 0x3c9   :  { %2845 = vmatprep.subr.bf16.mxu0 %v3795_v53  ;;  %2875 = vmatpush1.bf16.msra.mxu1 %v3619_v27 }
 0x3ca   :  { %2877 = vmatprep.subr.bf16.mxu1 %v3622_v31 }
 0x3cc   :  { %2847 = vmatpush1.bf16.msra.mxu0 %v3801_v21 }
 0x3cd   :  { %2849 = vmatprep.subr.bf16.mxu0 %v3804_v24  ;;  %2879 = vmatpush1.bf16.msra.mxu1 %v3629_v39 }
 0x3ce   :  { %2881 = vmatprep.subr.bf16.mxu1 %v3634_v43 }
 0x3d0   :  { %2851 = vmatpush1.bf16.msra.mxu0 %v3809_v37 }
 0x3d1   :  { %2853 = vmatprep.subr.bf16.mxu0 %v3812_v38  ;;  %2883 = vmatpush1.bf16.msra.mxu1 %v3640_v51 }
 0x3d2   :  { %2885 = vmatprep.subr.bf16.mxu1 %v3646_v55 }
 0x3d4   :  { %2855 = vmatpush1.bf16.msra.mxu0 %v3817_v52 }
 0x3d5   :  { %2857 = vmatprep.subr.bf16.mxu0 %v3820_v59  ;;  %2887 = vmatpush1.bf16.msra.mxu1 %v3653_v63 }
 0x3d6   :  { %2889 = vmatprep.subr.bf16.mxu1 %v3659_v5 }
 0x3d8   :  { %2859 = vmatpush1.bf16.msra.mxu0 %v3825_v17 }
 0x3d9   :  { %2861 = vmatprep.subr.bf16.mxu0 %v3828_v26  ;;  %2891 = vmatpush1.bf16.msra.mxu1 %v3665_v14 }
 0x3da   :  { %2893 = vmatprep.subr.bf16.mxu1 %v3671_v19 }
 0x3dc   :  { %2863 = vmatpush1.bf16.msra.mxu0 %v3833_v41 }
 0x3dd   :  { %2865 = vmatprep.subr.bf16.mxu0 %v3836_v49  ;;  %2895 = vmatpush1.bf16.msra.mxu1 %v3677_v29 }
 0x3de   :  { %2897 = vmatprep.subr.bf16.mxu1 %v3683_v34 }
 0x3e0   :  { %2867 = vmatpush1.bf16.msra.mxu0 %v3841_v8 }
 0x3e1   :  { %2901 = vmatprep.subr.bf16.mxu0 %v3625_v33  ;;  %2899 = vmatpush1.bf16.msra.mxu1 %v3689_v44 }
 0x3e2   :  { %2933 = vmatprep.subr.bf16.mxu1 %v3752_v3 }
 0x3e3   :  { %1259 = vmatmul.mubr.f32.vlgmr.msra.gmra.mrb[10].mxu0 %v3951_v28 }
 0x3e4   :  { %2903 = vmatpush1.bf16.msra.mxu0 %v3631_v42  ;;  %1422 = vmatprep.mubr.f32.mxu0 %v4309_v12 }
 0x3e5   :  { %2905 = vmatprep.subr.bf16.mxu0 %v3637_v45 }
 0x3e8   :  { %2907 = vmatpush1.bf16.msra.mxu0 %v3643_v54 }
 0x3e9   :  { %2909 = vmatprep.subr.bf16.mxu0 %v3649_v57 }
 0x3ec   :  { %2911 = vmatpush1.bf16.msra.mxu0 %v3656_v4 }
 0x3ed   :  { %2913 = vmatprep.subr.bf16.mxu0 %v3662_v7 }
 0x3f0   :  { %2915 = vmatpush1.bf16.msra.mxu0 %v3668_v18 }
 0x3f1   :  { %2917 = vmatprep.subr.bf16.mxu0 %v4319_v22 }
 0x3f4   :  { %2919 = vmatpush1.bf16.msra.mxu0 %v4320_v32 }
 0x3f5   :  { %2921 = vmatprep.subr.bf16.mxu0 %v4321_v36 }
 0x3f8   :  { %2923 = vmatpush1.bf16.msra.mxu0 %v4322_v40 }
 0x3f9   :  { %2925 = vmatprep.subr.bf16.mxu0 %v4323_v6 }
 0x3fc   :  { %2927 = vmatpush1.bf16.msra.mxu0 %v4324_v35 }
 0x3fd   :  { %2929 = vmatprep.subr.bf16.mxu0 %v4325_v58 }
 0x400   :  { %2931 = vmatpush1.bf16.msra.mxu0 %v4326_v62 }
 0x401   :  { %2965 = vmatprep.subr.bf16.mxu0 %v4327_v0 }
 0x496   :  { %v1118_v11 = vpop.f32.mrb[8].mxu0  ;;  %v1189_v61 = vpop.f32.mrb[10].mxu1 }
 0x497   :  { %v1119_v13 = vadd.f32 %v1118_v11, %v4328_v56  ;;  %v1120_v60 = vpop.f32.mrb[9].mxu0  ;;  %v1191_v1 = vpop.f32.mrb[11].mxu1  ;;  %v1190_v58 = vadd.f32 %v1189_v61, %v4318_v50 }
 0x498   :  { %v1192_v30 = vadd.f32 %v1191_v1, %v4317_v9  ;;  %v1121_v0 = vadd.f32 %v1120_v60, %v3771_v25  ;;  %v4336_v60 = vld [vmem:[#allocation24_spill] sm:$0xff] }
 0x49a   :  { %v1265_v23 = vadd.f32 %v1192_v30, %v1119_v13 }
 0x49c   :  { %v2345_v46 = vmul.f32 -1.442695, %v1265_v23 }
 0x49e   :  { %3326 = vpow2.f32 %v2345_v46 }
 0x4a8   :  { %v3327_v6 = vpop.eup %3326 }
 0x4a9   :  { %v1269_v40 = vadd.f32 1.0, %v3327_v6 }
 0x4ab   :  { %3328 = vrcp.f32 %v1269_v40 }
 0x4b5   :  { %v3329_v35 = vpop.eup %3328 }
 0x4b6   :  { %v1260_v62 = vpop.f32.mrb[10].mxu0  ;;  %v1279_v36 = vmul.f32 %v3329_v35, %v1190_v58 }
 0x4b7   :  { %v1261_v32 = vadd.f32 %v1260_v62, %v3877_v10  ;;  %v1262_v11 = vpop.f32.mrb[11].mxu0  ;;  %v4333_v62 = vld [vmem:[#allocation21_spill] sm:$0xff] }
 0x4b8   :  { %v1263_v56 = vadd.f32 %v1262_v11, %v3880_v47  ;;  %v4337_v11 = vld [vmem:[#allocation16_spill] sm:$0xff] }
 0x4b9   :  { %v1272_v22 = vadd.f32 %v1261_v32, %v1121_v0  ;;  %v4331_v32 = vld [vmem:[#allocation19_spill] sm:$0xff]  ;;  %v4334_v0 = vld [vmem:[#allocation22_spill] sm:$0xff] }
 0x4ba   :  { %v1280_v1 = vadd.f32 %v1279_v36, %v1263_v56  ;;  %v4332_v36 = vld [vmem:[#allocation20_spill] sm:$0xff]  ;;  %v4335_v56 = vld [vmem:[#allocation23_spill] sm:$0xff] }
 0x4bb   :  { %v2346_v13 = vmul.f32 -1.442695, %v1272_v22  ;;  %v4330_v22 = vld [vmem:[#allocation18_spill] sm:$0xff] }
 0x4bd   :  { %3330 = vpow2.f32 %v2346_v13 }
 0x4c7   :  { %v3331_v30 = vpop.eup %3330 }
 0x4c8   :  { %v1276_v23 = vadd.f32 1.0, %v3331_v30  ;;  %v4338_v30 = vld [vmem:[#allocation25_spill] sm:$0xff] }
 0x4ca   :  { %3332 = vrcp.f32 %v1276_v23 }
 0x4cb   :  { %3334 = vtanh.f32 %v1280_v1 }
 0x4d4   :  { %v3333_v40 = vpop.eup %3332 }
 0x4d5   :  { %v1282_v6 = vsub.f32 1.0, %v3333_v40  ;;  %v3335_v61 = vpop.eup %3334  ;;  %v1284_v35 = vmul.f32 %v3333_v40, %v3951_v28  ;;  %v4329_v28 = vld [vmem:[#allocation17_spill] sm:$0xff] }
 0x4d7   :  { %v1283_v46 = vmul.f32 %v3335_v61, %v1282_v6 }
 0x4d9   :  { %v4015_v58 = vadd.f32 %v1284_v35, %v1283_v46 }
 0x4db   :  { %1286 = vst [vmem:[#allocation2 + $0x4] sm:$0x1] %v4015_v58  ;;  %1352 = vmatmul.mubr.f32.vlgmr.msra.gmra.mrb[12].mxu1 %v4015_v58  ;;  %1423 = vmatmul.mubr.f32.vlgmr.msra.gmra.mrb[12].mxu0 %v4015_v58 }
 0x4dc   :  { %2935 = vmatpush1.bf16.msra.mxu1 %v3781_v15  ;;  %1493 = vmatprep.mubr.f32.mxu1 %v4309_v12 }
 0x4dd   :  { %2937 = vmatprep.subr.bf16.mxu1 %v3785_v48  ;;  %2967 = vmatpush1.bf16.msra.mxu0 %v3612_v16 }
 0x4de   :  { %2969 = vmatprep.subr.bf16.mxu0 %v3615_v20  ;;  %1586 = vmatprep.mubr.f32.mxu0 %v4309_v12 }
 0x4e0   :  { %2939 = vmatpush1.bf16.msra.mxu1 %v3791_v2 }
 0x4e1   :  { %2941 = vmatprep.subr.bf16.mxu1 %v3795_v53  ;;  %2971 = vmatpush1.bf16.msra.mxu0 %v3619_v27 }
 0x4e2   :  { %2973 = vmatprep.subr.bf16.mxu0 %v3622_v31 }
 0x4e4   :  { %2943 = vmatpush1.bf16.msra.mxu1 %v3801_v21 }
 0x4e5   :  { %2945 = vmatprep.subr.bf16.mxu1 %v3804_v24  ;;  %2975 = vmatpush1.bf16.msra.mxu0 %v3629_v39 }
 0x4e6   :  { %2977 = vmatprep.subr.bf16.mxu0 %v3634_v43 }
 0x4e8   :  { %2947 = vmatpush1.bf16.msra.mxu1 %v3809_v37 }
 0x4e9   :  { %2949 = vmatprep.subr.bf16.mxu1 %v3812_v38  ;;  %2979 = vmatpush1.bf16.msra.mxu0 %v3640_v51 }
 0x4ea   :  { %2981 = vmatprep.subr.bf16.mxu0 %v3646_v55 }
 0x4ec   :  { %2951 = vmatpush1.bf16.msra.mxu1 %v3817_v52 }
 0x4ed   :  { %2953 = vmatprep.subr.bf16.mxu1 %v3820_v59  ;;  %2983 = vmatpush1.bf16.msra.mxu0 %v3653_v63 }
 0x4ee   :  { %2985 = vmatprep.subr.bf16.mxu0 %v3659_v5 }
 0x4f0   :  { %2955 = vmatpush1.bf16.msra.mxu1 %v3825_v17 }
 0x4f1   :  { %2957 = vmatprep.subr.bf16.mxu1 %v3828_v26  ;;  %2987 = vmatpush1.bf16.msra.mxu0 %v3665_v14 }
 0x4f2   :  { %2989 = vmatprep.subr.bf16.mxu0 %v3671_v19 }
 0x4f4   :  { %2959 = vmatpush1.bf16.msra.mxu1 %v3833_v41 }
 0x4f5   :  { %2961 = vmatprep.subr.bf16.mxu1 %v3836_v49  ;;  %2991 = vmatpush1.bf16.msra.mxu0 %v3677_v29 }
 0x4f6   :  { %2993 = vmatprep.subr.bf16.mxu0 %v3683_v34 }
 0x4f8   :  { %2963 = vmatpush1.bf16.msra.mxu1 %v3841_v8 }
 0x4f9   :  { %2997 = vmatprep.subr.bf16.mxu1 %v3625_v33  ;;  %2995 = vmatpush1.bf16.msra.mxu0 %v3689_v44 }
 0x4fa   :  { %3029 = vmatprep.subr.bf16.mxu0 %v3752_v3 }
 0x4fb   :  { %1494 = vmatmul.mubr.f32.vlgmr.msra.gmra.mrb[14].mxu1 %v4015_v58 }
 0x4fc   :  { %2999 = vmatpush1.bf16.msra.mxu1 %v3631_v42  ;;  %1657 = vmatprep.mubr.f32.mxu1 %v4309_v12 }
 0x4fd   :  { %3001 = vmatprep.subr.bf16.mxu1 %v3637_v45 }
 0x500   :  { %3003 = vmatpush1.bf16.msra.mxu1 %v3643_v54 }
 0x501   :  { %3005 = vmatprep.subr.bf16.mxu1 %v3649_v57 }
 0x504   :  { %3007 = vmatpush1.bf16.msra.mxu1 %v3656_v4 }
 0x505   :  { %3009 = vmatprep.subr.bf16.mxu1 %v3662_v7 }
 0x508   :  { %3011 = vmatpush1.bf16.msra.mxu1 %v3668_v18 }
 0x509   :  { %3013 = vmatprep.subr.bf16.mxu1 %v4329_v28 }
 0x50c   :  { %3015 = vmatpush1.bf16.msra.mxu1 %v4330_v22 }
 0x50d   :  { %3017 = vmatprep.subr.bf16.mxu1 %v4331_v32 }
 0x510   :  { %3019 = vmatpush1.bf16.msra.mxu1 %v4332_v36 }
 0x511   :  { %3021 = vmatprep.subr.bf16.mxu1 %v4333_v62 }
 0x514   :  { %3023 = vmatpush1.bf16.msra.mxu1 %v4334_v0 }
 0x515   :  { %3025 = vmatprep.subr.bf16.mxu1 %v4335_v56 }
 0x518   :  { %3027 = vmatpush1.bf16.msra.mxu1 %v4336_v60 }
 0x519   :  { %3061 = vmatprep.subr.bf16.mxu1 %v4337_v11 }
 0x5ae   :  { %v1353_v1 = vpop.f32.mrb[12].mxu1  ;;  %v1424_v13 = vpop.f32.mrb[12].mxu0 }
 0x5af   :  { %v1354_v23 = vadd.f32 %v1353_v1, %v4338_v30  ;;  %v1355_v40 = vpop.f32.mrb[13].mxu1  ;;  %v1426_v6 = vpop.f32.mrb[13].mxu0  ;;  %v1425_v56 = vadd.f32 %v1424_v13, %v4318_v50 }
 0x5b0   :  { %v1427_v61 = vadd.f32 %v1426_v6, %v4317_v9  ;;  %v1356_v11 = vadd.f32 %v1355_v40, %v3771_v25  ;;  %v4346_v40 = vld [vmem:[#allocation24_spill] sm:$0xff] }
 0x5b2   :  { %v1500_v46 = vadd.f32 %v1427_v61, %v1354_v23 }
 0x5b4   :  { %v2347_v35 = vmul.f32 -1.442695, %v1500_v46 }
 0x5b6   :  { %3336 = vpow2.f32 %v2347_v35 }
 0x5c0   :  { %v3337_v62 = vpop.eup %3336 }
 0x5c1   :  { %v1504_v36 = vadd.f32 1.0, %v3337_v62 }
 0x5c3   :  { %3338 = vrcp.f32 %v1504_v36 }
 0x5cd   :  { %v3339_v0 = vpop.eup %3338 }
 0x5ce   :  { %v1495_v60 = vpop.f32.mrb[14].mxu1  ;;  %v1514_v32 = vmul.f32 %v3339_v0, %v1425_v56 }
 0x5cf   :  { %v1496_v22 = vadd.f32 %v1495_v60, %v3877_v10  ;;  %v1497_v1 = vpop.f32.mrb[15].mxu1  ;;  %v4343_v60 = vld [vmem:[#allocation21_spill] sm:$0xff] }
 0x5d0   :  { %v1498_v30 = vadd.f32 %v1497_v1, %v3880_v47  ;;  %v4347_v1 = vld [vmem:[#allocation16_spill] sm:$0xff] }
 0x5d1   :  { %v1507_v28 = vadd.f32 %v1496_v22, %v1356_v11  ;;  %v4341_v22 = vld [vmem:[#allocation19_spill] sm:$0xff]  ;;  %v4344_v11 = vld [vmem:[#allocation22_spill] sm:$0xff] }
 0x5d2   :  { %v1515_v6 = vadd.f32 %v1514_v32, %v1498_v30  ;;  %v4342_v32 = vld [vmem:[#allocation20_spill] sm:$0xff]  ;;  %v4345_v30 = vld [vmem:[#allocation23_spill] sm:$0xff] }
 0x5d3   :  { %v2348_v23 = vmul.f32 -1.442695, %v1507_v28  ;;  %v4340_v28 = vld [vmem:[#allocation18_spill] sm:$0xff] }
 0x5d5   :  { %3340 = vpow2.f32 %v2348_v23 }
 0x5df   :  { %v3341_v61 = vpop.eup %3340 }
 0x5e0   :  { %v1511_v46 = vadd.f32 1.0, %v3341_v61  ;;  %v4348_v61 = vld [vmem:[#allocation25_spill] sm:$0xff] }
 0x5e2   :  { %3342 = vrcp.f32 %v1511_v46 }
 0x5e3   :  { %3344 = vtanh.f32 %v1515_v6 }
 0x5ec   :  { %v3343_v36 = vpop.eup %3342 }
 0x5ed   :  { %v1517_v62 = vsub.f32 1.0, %v3343_v36  ;;  %v3345_v13 = vpop.eup %3344  ;;  %v1519_v0 = vmul.f32 %v3343_v36, %v4015_v58  ;;  %v4339_v58 = vld [vmem:[#allocation17_spill] sm:$0xff] }
 0x5ef   :  { %v1518_v35 = vmul.f32 %v3345_v13, %v1517_v62 }
 0x5f1   :  { %v4079_v56 = vadd.f32 %v1519_v0, %v1518_v35 }
 0x5f3   :  { %1521 = vst [vmem:[#allocation2 + $0x3] sm:$0x1] %v4079_v56  ;;  %1587 = vmatmul.mubr.f32.vlgmr.msra.gmra.mrb[14].mxu0 %v4079_v56  ;;  %1658 = vmatmul.mubr.f32.vlgmr.msra.gmra.mrb[16].mxu1 %v4079_v56 }
 0x5f4   :  { %3031 = vmatpush1.bf16.msra.mxu0 %v3781_v15  ;;  %1728 = vmatprep.mubr.f32.mxu0 %v4309_v12 }
 0x5f5   :  { %3033 = vmatprep.subr.bf16.mxu0 %v3785_v48  ;;  %3063 = vmatpush1.bf16.msra.mxu1 %v3612_v16 }
 0x5f6   :  { %3065 = vmatprep.subr.bf16.mxu1 %v3615_v20  ;;  %1821 = vmatprep.mubr.f32.mxu1 %v4309_v12 }
 0x5f8   :  { %3035 = vmatpush1.bf16.msra.mxu0 %v3791_v2 }
 0x5f9   :  { %3037 = vmatprep.subr.bf16.mxu0 %v3795_v53  ;;  %3067 = vmatpush1.bf16.msra.mxu1 %v3619_v27 }
 0x5fa   :  { %3069 = vmatprep.subr.bf16.mxu1 %v3622_v31 }
 0x5fc   :  { %3039 = vmatpush1.bf16.msra.mxu0 %v3801_v21 }
 0x5fd   :  { %3041 = vmatprep.subr.bf16.mxu0 %v3804_v24  ;;  %3071 = vmatpush1.bf16.msra.mxu1 %v3629_v39 }
 0x5fe   :  { %3073 = vmatprep.subr.bf16.mxu1 %v3634_v43 }
 0x600   :  { %3043 = vmatpush1.bf16.msra.mxu0 %v3809_v37 }
 0x601   :  { %3045 = vmatprep.subr.bf16.mxu0 %v3812_v38  ;;  %3075 = vmatpush1.bf16.msra.mxu1 %v3640_v51 }
 0x602   :  { %3077 = vmatprep.subr.bf16.mxu1 %v3646_v55 }
 0x604   :  { %3047 = vmatpush1.bf16.msra.mxu0 %v3817_v52 }
 0x605   :  { %3049 = vmatprep.subr.bf16.mxu0 %v3820_v59  ;;  %3079 = vmatpush1.bf16.msra.mxu1 %v3653_v63 }
 0x606   :  { %3081 = vmatprep.subr.bf16.mxu1 %v3659_v5 }
 0x608   :  { %3051 = vmatpush1.bf16.msra.mxu0 %v3825_v17 }
 0x609   :  { %3053 = vmatprep.subr.bf16.mxu0 %v3828_v26  ;;  %3083 = vmatpush1.bf16.msra.mxu1 %v3665_v14 }
 0x60a   :  { %3085 = vmatprep.subr.bf16.mxu1 %v3671_v19 }
 0x60c   :  { %3055 = vmatpush1.bf16.msra.mxu0 %v3833_v41 }
 0x60d   :  { %3057 = vmatprep.subr.bf16.mxu0 %v3836_v49  ;;  %3087 = vmatpush1.bf16.msra.mxu1 %v3677_v29 }
 0x60e   :  { %3089 = vmatprep.subr.bf16.mxu1 %v3683_v34 }
 0x610   :  { %3059 = vmatpush1.bf16.msra.mxu0 %v3841_v8 }
 0x611   :  { %3093 = vmatprep.subr.bf16.mxu0 %v3625_v33  ;;  %3091 = vmatpush1.bf16.msra.mxu1 %v3689_v44 }
 0x612   :  { %3125 = vmatprep.subr.bf16.mxu1 %v3752_v3 }
 0x613   :  { %1729 = vmatmul.mubr.f32.vlgmr.msra.gmra.mrb[16].mxu0 %v4079_v56 }
 0x614   :  { %3095 = vmatpush1.bf16.msra.mxu0 %v3631_v42  ;;  %1892 = vmatprep.mubr.f32.mxu0 %v4309_v12 }
 0x615   :  { %3097 = vmatprep.subr.bf16.mxu0 %v3637_v45 }
 0x618   :  { %3099 = vmatpush1.bf16.msra.mxu0 %v3643_v54 }
 0x619   :  { %3101 = vmatprep.subr.bf16.mxu0 %v3649_v57 }
 0x61c   :  { %3103 = vmatpush1.bf16.msra.mxu0 %v3656_v4 }
 0x61d   :  { %3105 = vmatprep.subr.bf16.mxu0 %v3662_v7 }
 0x620   :  { %3107 = vmatpush1.bf16.msra.mxu0 %v3668_v18 }
 0x621   :  { %3109 = vmatprep.subr.bf16.mxu0 %v4339_v58 }
 0x624   :  { %3111 = vmatpush1.bf16.msra.mxu0 %v4340_v28 }
 0x625   :  { %3113 = vmatprep.subr.bf16.mxu0 %v4341_v22 }
 0x628   :  { %3115 = vmatpush1.bf16.msra.mxu0 %v4342_v32 }
 0x629   :  { %3117 = vmatprep.subr.bf16.mxu0 %v4343_v60 }
 0x62c   :  { %3119 = vmatpush1.bf16.msra.mxu0 %v4344_v11 }
 0x62d   :  { %3121 = vmatprep.subr.bf16.mxu0 %v4345_v30 }
 0x630   :  { %3123 = vmatpush1.bf16.msra.mxu0 %v4346_v40 }
 0x631   :  { %3157 = vmatprep.subr.bf16.mxu0 %v4347_v1 }
 0x6c6   :  { %v1588_v6 = vpop.f32.mrb[14].mxu0  ;;  %v1659_v23 = vpop.f32.mrb[16].mxu1 }
 0x6c7   :  { %v1589_v46 = vadd.f32 %v1588_v6, %v4348_v61  ;;  %v1590_v36 = vpop.f32.mrb[15].mxu0  ;;  %v1661_v62 = vpop.f32.mrb[17].mxu1  ;;  %v1660_v30 = vadd.f32 %v1659_v23, %v4318_v50 }
 0x6c8   :  { %v1662_v13 = vadd.f32 %v1661_v62, %v4317_v9  ;;  %v1591_v1 = vadd.f32 %v1590_v36, %v3771_v25 }
 0x6ca   :  { %v1735_v35 = vadd.f32 %v1662_v13, %v1589_v46 }
 0x6cc   :  { %v2349_v0 = vmul.f32 -1.442695, %v1735_v35 }
 0x6ce   :  { %3346 = vpow2.f32 %v2349_v0 }
 0x6d8   :  { %v3347_v60 = vpop.eup %3346 }
 0x6d9   :  { %v1739_v32 = vadd.f32 1.0, %v3347_v60 }
 0x6db   :  { %3348 = vrcp.f32 %v1739_v32 }
 0x6e5   :  { %v3349_v11 = vpop.eup %3348 }
 0x6e6   :  { %v1730_v40 = vpop.f32.mrb[16].mxu0  ;;  %v1749_v22 = vmul.f32 %v3349_v11, %v1660_v30 }
 0x6e7   :  { %v1731_v28 = vadd.f32 %v1730_v40, %v3877_v10  ;;  %v1732_v6 = vpop.f32.mrb[17].mxu0 }
 0x6e8   :  { %v1733_v61 = vadd.f32 %v1732_v6, %v3880_v47 }
 0x6e9   :  { %v1742_v58 = vadd.f32 %v1731_v28, %v1591_v1 }
 0x6ea   :  { %v1750_v62 = vadd.f32 %v1749_v22, %v1733_v61 }
 0x6eb   :  { %v2350_v46 = vmul.f32 -1.442695, %v1742_v58 }
 0x6ed   :  { %3350 = vpow2.f32 %v2350_v46 }
 0x6f7   :  { %v3351_v13 = vpop.eup %3350 }
 0x6f8   :  { %v1746_v35 = vadd.f32 1.0, %v3351_v13 }
 0x6fa   :  { %3352 = vrcp.f32 %v1746_v35 }
 0x6fb   :  { %3354 = vtanh.f32 %v1750_v62 }
 0x704   :  { %v3353_v32 = vpop.eup %3352 }
 0x705   :  { %v1752_v60 = vsub.f32 1.0, %v3353_v32  ;;  %v3355_v23 = vpop.eup %3354  ;;  %v1754_v11 = vmul.f32 %v3353_v32, %v4079_v56 }
 0x707   :  { %v1753_v0 = vmul.f32 %v3355_v23, %v1752_v60  ;;  %v2239_v23 = vld [vmem:[#allocation9 + $0x58] sm:$0xff] }
 0x709   :  { %v4143_v30 = vadd.f32 %v1754_v11, %v1753_v0  ;;  %v2240_v11 = vld [vmem:[#allocation9 + $0x60] sm:$0xff] }
 0x70b   :  { %1756 = vst [vmem:[#allocation2 + $0x2] sm:$0x1] %v4143_v30  ;;  %1822 = vmatmul.mubr.f32.vlgmr.msra.gmra.mrb[18].mxu1 %v4143_v30  ;;  %1893 = vmatmul.mubr.f32.vlgmr.msra.gmra.mrb[18].mxu0 %v4143_v30 }
 0x70c   :  { %3127 = vmatpush1.bf16.msra.mxu1 %v3781_v15  ;;  %1963 = vmatprep.mubr.f32.mxu1 %v4309_v12 }
 0x70d   :  { %3129 = vmatprep.subr.bf16.mxu1 %v3785_v48  ;;  %3159 = vmatpush1.bf16.msra.mxu0 %v3612_v16  ;;  %v4349_v16 = vld [vmem:[#allocation17_spill] sm:$0xff] }
 0x70e   :  { %3161 = vmatprep.subr.bf16.mxu0 %v3615_v20  ;;  %2056 = vmatprep.mubr.f32.mxu0 %v4309_v12  ;;  %v4350_v20 = vld [vmem:[#allocation18_spill] sm:$0xff] }
 0x710   :  { %3131 = vmatpush1.bf16.msra.mxu1 %v3791_v2 }
 0x711   :  { %3133 = vmatprep.subr.bf16.mxu1 %v3795_v53  ;;  %3163 = vmatpush1.bf16.msra.mxu0 %v3619_v27  ;;  %v4351_v27 = vld [vmem:[#allocation19_spill] sm:$0xff] }
 0x712   :  { %3165 = vmatprep.subr.bf16.mxu0 %v3622_v31  ;;  %v4352_v31 = vld [vmem:[#allocation20_spill] sm:$0xff] }
 0x714   :  { %3135 = vmatpush1.bf16.msra.mxu1 %v3801_v21 }
 0x715   :  { %3137 = vmatprep.subr.bf16.mxu1 %v3804_v24  ;;  %3167 = vmatpush1.bf16.msra.mxu0 %v3629_v39  ;;  %v4354_v39 = vld [vmem:[#allocation22_spill] sm:$0xff] }
 0x716   :  { %3169 = vmatprep.subr.bf16.mxu0 %v3634_v43  ;;  %v4356_v43 = vld [vmem:[#allocation24_spill] sm:$0xff] }
 0x718   :  { %3139 = vmatpush1.bf16.msra.mxu1 %v3809_v37 }
 0x719   :  { %3141 = vmatprep.subr.bf16.mxu1 %v3812_v38  ;;  %3171 = vmatpush1.bf16.msra.mxu0 %v3640_v51 }
 0x71a   :  { %3173 = vmatprep.subr.bf16.mxu0 %v3646_v55  ;;  %v4358_v55 = vld [vmem:[#allocation25_spill] sm:$0xff] }
 0x71c   :  { %3143 = vmatpush1.bf16.msra.mxu1 %v3817_v52 }
 0x71d   :  { %3145 = vmatprep.subr.bf16.mxu1 %v3820_v59  ;;  %3175 = vmatpush1.bf16.msra.mxu0 %v3653_v63 }
 0x71e   :  { %3177 = vmatprep.subr.bf16.mxu0 %v3659_v5 }
 0x720   :  { %3147 = vmatpush1.bf16.msra.mxu1 %v3825_v17 }
 0x721   :  { %3149 = vmatprep.subr.bf16.mxu1 %v3828_v26  ;;  %3179 = vmatpush1.bf16.msra.mxu0 %v3665_v14 }
 0x722   :  { %3181 = vmatprep.subr.bf16.mxu0 %v3671_v19 }
 0x724   :  { %3151 = vmatpush1.bf16.msra.mxu1 %v3833_v41 }
 0x725   :  { %3153 = vmatprep.subr.bf16.mxu1 %v3836_v49  ;;  %3183 = vmatpush1.bf16.msra.mxu0 %v3677_v29 }
 0x726   :  { %3185 = vmatprep.subr.bf16.mxu0 %v3683_v34 }
 0x728   :  { %3155 = vmatpush1.bf16.msra.mxu1 %v3841_v8 }
 0x729   :  { %3189 = vmatprep.subr.bf16.mxu1 %v3625_v33  ;;  %3187 = vmatpush1.bf16.msra.mxu0 %v3689_v44  ;;  %v4353_v33 = vld [vmem:[#allocation21_spill] sm:$0xff] }
 0x72a   :  { %3221 = vmatprep.subr.bf16.mxu0 %v3752_v3 }
 0x72b   :  { %1964 = vmatmul.mubr.f32.vlgmr.msra.gmra.mrb[20].mxu1 %v4143_v30 }
 0x72c   :  { %3191 = vmatpush1.bf16.msra.mxu1 %v3631_v42  ;;  %2127 = vmatprep.mubr.f32.mxu1 %v4309_v12  ;;  %v4355_v42 = vld [vmem:[#allocation23_spill] sm:$0xff] }
 0x72d   :  { %3193 = vmatprep.subr.bf16.mxu1 %v3637_v45  ;;  %v4357_v45 = vmov 0.0|0.0  }
 0x730   :  { %3195 = vmatpush1.bf16.msra.mxu1 %v3643_v54 }
 0x731   :  { %3197 = vmatprep.subr.bf16.mxu1 %v3649_v57 }
 0x734   :  { %3199 = vmatpush1.bf16.msra.mxu1 %v3656_v4 }
 0x735   :  { %3201 = vmatprep.subr.bf16.mxu1 %v3662_v7 }
 0x738   :  { %3203 = vmatpush1.bf16.msra.mxu1 %v3668_v18 }
 0x739   :  { %3205 = vmatprep.subr.bf16.mxu1 %v4349_v16 }
 0x73c   :  { %3207 = vmatpush1.bf16.msra.mxu1 %v4350_v20  ;;  %v2242_v20 = vld [vmem:[#allocation9 + $0x70] sm:$0xff] }
 0x73d   :  { %3209 = vmatprep.subr.bf16.mxu1 %v4351_v27  ;;  %v2243_v27 = vld [vmem:[#allocation9 + $0x78] sm:$0xff] }
 0x740   :  { %3211 = vmatpush1.bf16.msra.mxu1 %v4352_v31  ;;  %v3274_v31 = vpack.c.bf16 %v2243_v27, %v2242_v20 }
 0x741   :  { %3213 = vmatprep.subr.bf16.mxu1 %v4353_v33 }
 0x744   :  { %3215 = vmatpush1.bf16.msra.mxu1 %v4354_v39 }
 0x745   :  { %3217 = vmatprep.subr.bf16.mxu1 %v4355_v42 }
 0x748   :  { %3219 = vmatpush1.bf16.msra.mxu1 %v4356_v43 }
 0x749   :  { %3252 = vmatprep.subr.bf16.mxu1 %v4357_v45 }
 0x7de   :  { %v1823_v51 = vpop.f32.mrb[18].mxu1  ;;  %v1894_v54 = vpop.f32.mrb[18].mxu0 }
 0x7df   :  { %v1824_v57 = vadd.f32 %v1823_v51, %v4358_v55  ;;  %v1825_v63 = vpop.f32.mrb[19].mxu1  ;;  %v1896_v4 = vpop.f32.mrb[19].mxu0  ;;  %v1895_v29 = vadd.f32 %v1894_v54, %v4318_v50 }
 0x7e0   :  { %v1897_v5 = vadd.f32 %v1896_v4, %v4317_v9  ;;  %v1826_v56 = vadd.f32 %v1825_v63, %v3771_v25 }
 0x7e2   :  { %v1970_v7 = vadd.f32 %v1897_v5, %v1824_v57 }
 0x7e4   :  { %v2351_v14 = vmul.f32 -1.442695, %v1970_v7 }
 0x7e6   :  { %3356 = vpow2.f32 %v2351_v14 }
 0x7f0   :  { %v3357_v18 = vpop.eup %3356 }
 0x7f1   :  { %v1974_v19 = vadd.f32 1.0, %v3357_v18 }
 0x7f3   :  { %3358 = vrcp.f32 %v1974_v19 }
 0x7fd   :  { %v3359_v34 = vpop.eup %3358 }
 0x7fe   :  { %v1965_v44 = vpop.f32.mrb[20].mxu1  ;;  %v1984_v3 = vmul.f32 %v3359_v34, %v1895_v29 }
 0x7ff   :  { %v1966_v58 = vadd.f32 %v1965_v44, %v3877_v10  ;;  %v1967_v28 = vpop.f32.mrb[21].mxu1 }
 0x800   :  { %v1968_v22 = vadd.f32 %v1967_v28, %v3880_v47 }
 0x801   :  { %v1977_v40 = vadd.f32 %v1966_v58, %v1826_v56 }
 0x802   :  { %v1985_v61 = vadd.f32 %v1984_v3, %v1968_v22 }
 0x803   :  { %v2352_v36 = vmul.f32 -1.442695, %v1977_v40 }
 0x805   :  { %3360 = vpow2.f32 %v2352_v36 }
 0x80f   :  { %v3361_v1 = vpop.eup %3360 }
 0x810   :  { %v1981_v6 = vadd.f32 1.0, %v3361_v1 }
 0x812   :  { %3362 = vrcp.f32 %v1981_v6 }
 0x813   :  { %3364 = vtanh.f32 %v1985_v61 }
 0x81c   :  { %v3363_v62 = vpop.eup %3362 }
 0x81d   :  { %v1987_v46 = vsub.f32 1.0, %v3363_v62  ;;  %v3365_v13 = vpop.eup %3364  ;;  %v1989_v32 = vmul.f32 %v3363_v62, %v4143_v30  ;;  %v2241_v30 = vld [vmem:[#allocation9 + $0x68] sm:$0xff] }
 0x81e   :  { %v3271_v16 = vpack.c.bf16 %v2241_v30, %v2240_v11 }
 0x81f   :  { %v1988_v35 = vmul.f32 %v3365_v13, %v1987_v46 }
 0x821   :  { %v4207_v60 = vadd.f32 %v1989_v32, %v1988_v35 }
 0x823   :  { %1991 = vst [vmem:[#allocation2 + $0x1] sm:$0x1] %v4207_v60  ;;  %2057 = vmatmul.mubr.f32.vlgmr.msra.gmra.mrb[20].mxu0 %v4207_v60  ;;  %2128 = vmatmul.mubr.f32.vlgmr.msra.gmra.mrb[22].mxu1 %v4207_v60 }
 0x824   :  { %3223 = vmatpush1.bf16.msra.mxu0 %v3781_v15  ;;  %2198 = vmatprep.mubr.f32.mxu0 %v4309_v12  ;;  %v2228_v15 = vld [vmem:[#allocation9] sm:$0xff] }
 0x825   :  { %3225 = vmatprep.subr.bf16.mxu0 %v3785_v48  ;;  %2457 = vmatprep.mubr.msk.f32.mxu1 %vm3506_vm0, %v4309_v12  ;;  %v2229_v48 = vld [vmem:[#allocation9 + $0x8] sm:$0xff]  ;;  %v2238_v12 = vld [vmem:[#allocation9 + $0x50] sm:$0xff] }
 0x826   :  { %v3268_v0 = vpack.c.bf16 %v2239_v23, %v2238_v12 }
 0x828   :  { %3227 = vmatpush1.bf16.msra.mxu0 %v3791_v2  ;;  %v3253_v2 = vpack.c.bf16 %v2229_v48, %v2228_v15 }
 0x829   :  { %3229 = vmatprep.subr.bf16.mxu0 %v3795_v53  ;;  %v2230_v53 = vld [vmem:[#allocation9 + $0x10] sm:$0xff] }
 0x82a   :  { %3254 = vmatpush3.bf16.msra.mxu1 %v3253_v2 }
 0x82b   :  { %3255 = vmatprep.subr.bf16.mxu1 %v4357_v45 }
 0x82c   :  { %3231 = vmatpush1.bf16.msra.mxu0 %v3801_v21  ;;  %v2231_v21 = vld [vmem:[#allocation9 + $0x18] sm:$0xff] }
 0x82d   :  { %3233 = vmatprep.subr.bf16.mxu0 %v3804_v24  ;;  %v3256_v24 = vpack.c.bf16 %v2231_v21, %v2230_v53 }
 0x82f   :  { %3257 = vmatpush3.bf16.msra.mxu1 %v3256_v24 }
 0x830   :  { %3235 = vmatpush1.bf16.msra.mxu0 %v3809_v37  ;;  %3258 = vmatprep.subr.bf16.mxu1 %v4357_v45  ;;  %v2232_v37 = vld [vmem:[#allocation9 + $0x20] sm:$0xff] }
 0x831   :  { %3237 = vmatprep.subr.bf16.mxu0 %v3812_v38  ;;  %v2233_v38 = vld [vmem:[#allocation9 + $0x28] sm:$0xff] }
 0x834   :  { %3239 = vmatpush1.bf16.msra.mxu0 %v3817_v52  ;;  %v3259_v52 = vpack.c.bf16 %v2233_v38, %v2232_v37 }
 0x835   :  { %3241 = vmatprep.subr.bf16.mxu0 %v3820_v59  ;;  %v2234_v59 = vld [vmem:[#allocation9 + $0x30] sm:$0xff] }
 0x836   :  { %3260 = vmatpush3.bf16.msra.mxu1 %v3259_v52 }
 0x837   :  { %3261 = vmatprep.subr.bf16.mxu1 %v4357_v45 }
 0x838   :  { %3243 = vmatpush1.bf16.msra.mxu0 %v3825_v17  ;;  %v2235_v17 = vld [vmem:[#allocation9 + $0x38] sm:$0xff] }
 0x839   :  { %3245 = vmatprep.subr.bf16.mxu0 %v3828_v26  ;;  %v3262_v26 = vpack.c.bf16 %v2235_v17, %v2234_v59 }
 0x83b   :  { %3263 = vmatpush3.bf16.msra.mxu1 %v3262_v26 }
 0x83c   :  { %3247 = vmatpush1.bf16.msra.mxu0 %v3833_v41  ;;  %3264 = vmatprep.subr.bf16.mxu1 %v4357_v45  ;;  %v2236_v41 = vld [vmem:[#allocation9 + $0x40] sm:$0xff] }
 0x83d   :  { %3249 = vmatprep.subr.bf16.mxu0 %v3836_v49  ;;  %v2237_v49 = vld [vmem:[#allocation9 + $0x48] sm:$0xff] }
 0x840   :  { %3251 = vmatpush1.bf16.msra.mxu0 %v3841_v8  ;;  %v3265_v8 = vpack.c.bf16 %v2237_v49, %v2236_v41 }
 0x842   :  { %3266 = vmatpush3.bf16.msra.mxu1 %v3265_v8 }
 0x843   :  { %2199 = vmatmul.mubr.f32.vlgmr.msra.gmra.mrb[22].mxu0 %v4207_v60  ;;  %3267 = vmatprep.subr.bf16.mxu1 %v4357_v45 }
 0x846   :  { %3269 = vmatpush3.bf16.msra.mxu1 %v3268_v0 }
 0x847   :  { %3270 = vmatprep.subr.bf16.mxu1 %v4357_v45 }
 0x84a   :  { %3272 = vmatpush3.bf16.msra.mxu1 %v3271_v16 }
 0x84b   :  { %3273 = vmatprep.subr.bf16.mxu1 %v4357_v45 }
 0x84e   :  { %3275 = vmatpush3.bf16.msra.mxu1 %v3274_v31 }
 0x8f6   :  { %v2058_v33 = vpop.f32.mrb[20].mxu0  ;;  %v2129_v39 = vpop.f32.mrb[22].mxu1 }
 0x8f7   :  { %v2059_v42 = vadd.f32 %v2058_v33, %v4358_v55  ;;  %v2060_v43 = vpop.f32.mrb[21].mxu0  ;;  %v2131_v51 = vpop.f32.mrb[23].mxu1  ;;  %v2130_v7 = vadd.f32 %v2129_v39, %v4318_v50 }
 0x8f8   :  { %v2132_v54 = vadd.f32 %v2131_v51, %v4317_v9  ;;  %v2061_v19 = vadd.f32 %v2060_v43, %v3771_v25 }
 0x8fa   :  { %v2205_v57 = vadd.f32 %v2132_v54, %v2059_v42 }
 0x8fc   :  { %v2353_v63 = vmul.f32 -1.442695, %v2205_v57 }
 0x8fe   :  { %3366 = vpow2.f32 %v2353_v63 }
 0x908   :  { %v3367_v4 = vpop.eup %3366 }
 0x909   :  { %v2209_v5 = vadd.f32 1.0, %v3367_v4 }
 0x90b   :  { %3368 = vrcp.f32 %v2209_v5 }
 0x915   :  { %v3369_v14 = vpop.eup %3368 }
 0x916   :  { %v2200_v18 = vpop.f32.mrb[22].mxu0  ;;  %v2219_v45 = vmul.f32 %v3369_v14, %v2130_v7 }
 0x917   :  { %v2201_v29 = vadd.f32 %v2200_v18, %v3877_v10  ;;  %v2202_v55 = vpop.f32.mrb[23].mxu0 }
 0x918   :  { %v2203_v34 = vadd.f32 %v2202_v55, %v3880_v47  ;;  %v2355_v47 = vld [vmem:[%s4267_s7] ss:$0 sm:$0xff] }
 0x919   :  { %v2212_v44 = vadd.f32 %v2201_v29, %v2061_v19 }
 0x91a   :  { %v2220_v9 = vadd.f32 %v2219_v45, %v2203_v34 }
 0x91b   :  { %v2354_v3 = vmul.f32 -1.442695, %v2212_v44 }
 0x91d   :  { %3370 = vpow2.f32 %v2354_v3 }
 0x927   :  { %v3371_v56 = vpop.eup %3370 }
 0x928   :  { %v2216_v58 = vadd.f32 1.0, %v3371_v56 }
 0x92a   :  { %3372 = vrcp.f32 %v2216_v58 }
 0x92b   :  { %3374 = vtanh.f32 %v2220_v9 }
 0x934   :  { %v3373_v28 = vpop.eup %3372 }
 0x935   :  { %v2222_v50 = vsub.f32 1.0, %v3373_v28  ;;  %v3375_v22 = vpop.eup %3374  ;;  %v2224_v40 = vmul.f32 %v3373_v28, %v4207_v60 }
 0x937   :  { %v2223_v61 = vmul.f32 %v3375_v22, %v2222_v50 }
 0x939   :  { %v2225_v25 = vadd.f32 %v2224_v40, %v2223_v61 }
 0x93b   :  { %2226 = vst [vmem:[#allocation2] sm:$0x1] %v2225_v25 }
 0x942   :  { %v2227_v10 = vld [vmem:[#allocation2] sm:$0xff] }
 0x943   :  { %2458 = vmatmul.mubr.f32.vlgmr.msra.gmra.mrb[24].mxu1 %v2227_v10 }
 0xa16   :  { %v2317_v36 = vpop.f32.mrb[24].mxu1 }
 0xa17   :  { %v2318_v1 = vadd.f32 %v2355_v47, %v2317_v36  ;;  %v2459_v6 = vpop.f32.mrb[25].mxu1 }
 0xa19   :  { %2321 = vst [vmem:[#allocation11] sm:$0xff] %v2318_v1 }
 0xa1a   :  { %3475 = shalt.err (!%p3472_p8)
}
 0xa1b   :  { %s3476_s20 = scalar_lea.hbm %s4268_s8, 128 }
 0xa1c   :  { %p3477_p9 = scmp.ne.s32.totalorder %s4268_s8, %s3476_s20  ;;  %p3480_p10 = scmp.lt.u32.totalorder %s3476_s20, %s4268_s8 }
 0xa1e   :  { %p3482_p11 = pnand %p3480_p10, %p3477_p9 }
 0xa20   :  { %3485 = shalt.err (!%p3482_p11)
}
 0xa21   :  { %2331 = dma.vmem_to_hbm [thread:$0]  %s2329_s17, 128, %s4268_s8, [#allocation5]  }
 0xa22   :  { %3492 = dma.done.wait [#allocation5], 128  }
 0xa23   :  { %3493 = vsyncadd [#allocation5], 4294967168 }
 0xa24   :  { %2335 = vsyncpa [#allocation4], 1 }
 0xa25   :  { %2336 = vsyncpa [#allocation7], 1 }
 0xa26   :  { %2337 = vsyncpa [#allocation10], 1 }
 0xa27   :  { %2338 = vsyncpa [#allocation5], 1 }

</bundles_post_ra>
